<compile_context>
chip_gen: v7x
topology: tpu7x:2x2x1
jax: 0.10.0
libtpu: 0.0.40
codegen_flags: <defaults>
</compile_context>

<pallas_src>
import math

import jax
import jax.numpy as jnp
from jax.experimental import pallas as pl
from jax.experimental.pallas import tpu as pltpu

_BN_EPS = 1e-5
_VMEM_LIMIT = 32 * 1024 * 1024  # conservative scoped-VMEM budget, safe on v5e/v6e/v7x


# ---------------------------------------------------------------------------
# Pallas kernels
# ---------------------------------------------------------------------------
def _deconv0_matmul_kernel(x_ref, w_ref, o_ref):
    # Layer 0 (1x1 spatial input): out columns = (kh, kw, c0).  bf16 x bf16 -> f32.
    o_ref[...] = jnp.dot(x_ref[...], w_ref[...], preferred_element_type=jnp.float32)


def _bn_relu_scatter_matmul_kernel(a_ref, gamma_ref, beta_ref, w_ref, o_ref):
    # Prologue: BatchNorm2d (training-mode batch stats, biased variance) + ReLU
    # of the *previous* layer, computed in f32 with one-pass sum / sum-of-squares.
    a = a_ref[...]                                   # (N, C) f32 pre-activation
    inv_n = 1.0 / a.shape[0]
    s1 = jnp.sum(a, axis=0, keepdims=True)           # per-channel sum
    s2 = jnp.sum(a * a, axis=0, keepdims=True)       # per-channel sum of squares
    mean = s1 * inv_n
    var = s2 * inv_n - mean * mean
    scale = gamma_ref[...] * jax.lax.rsqrt(var + _BN_EPS)
    shift = beta_ref[...] - mean * scale
    h = jnp.maximum(a * scale + shift, 0.0)          # BN + ReLU (f32 epilogue)
    # Scatter-form transposed conv: (N, C) @ (C, k*k*Cout) -> lane-dense output.
    o_ref[...] = jnp.dot(h.astype(jnp.bfloat16), w_ref[...],
                         preferred_element_type=jnp.float32)


def _tanh_l2norm_kernel(t_ref, o_ref):
    # Transposed layout: rows = channels (3), cols = pixels (lane-dense).
    t = jnp.tanh(t_ref[...])
    nrm = jnp.sqrt(jnp.sum(t * t, axis=0, keepdims=True))
    nrm = nrm + (nrm == 0.0).astype(jnp.float32)     # torch zero-protection
    o_ref[...] = t / nrm


# ---------------------------------------------------------------------------
# pallas_call wrappers
# ---------------------------------------------------------------------------
def _pick_col_tile(n):
    for t in (512, 256, 128):
        if n % t == 0:
            return t
    return n


def _deconv0_call(x_b, w0r):
    B, K = x_b.shape
    N = w0r.shape[1]
    tn = _pick_col_tile(N)
    return pl.pallas_call(
        _deconv0_matmul_kernel,
        out_shape=jax.ShapeDtypeStruct((B, N), jnp.float32),
        grid=(N // tn,),
        in_specs=[
            pl.BlockSpec((B, K), lambda j: (0, 0)),
            pl.BlockSpec((K, tn), lambda j: (0, j)),
        ],
        out_specs=pl.BlockSpec((B, tn), lambda j: (0, j)),
        compiler_params=pltpu.CompilerParams(
            dimension_semantics=("parallel",),
            vmem_limit_bytes=_VMEM_LIMIT,
        ),
    )(x_b, w0r)


def _bn_relu_scatter_call(a, gamma, beta, w):
    # Single full block: BN batch statistics must reduce over the whole B*H*W
    # row extent (row tiling would need a two-pass cross-tile reduction).  At
    # these sizes (<=512x256 f32 ~= 0.5 MiB) one block fits VMEM on every gen.
    N, C = a.shape
    M = w.shape[1]
    return pl.pallas_call(
        _bn_relu_scatter_matmul_kernel,
        out_shape=jax.ShapeDtypeStruct((N, M), jnp.float32),
        grid=(1,),
        in_specs=[
            pl.BlockSpec((N, C), lambda i: (0, 0)),
            pl.BlockSpec((1, C), lambda i: (0, 0)),
            pl.BlockSpec((1, C), lambda i: (0, 0)),
            pl.BlockSpec((C, M), lambda i: (0, 0)),
        ],
        out_specs=pl.BlockSpec((N, M), lambda i: (0, 0)),
        compiler_params=pltpu.CompilerParams(
            dimension_semantics=("arbitrary",),
            vmem_limit_bytes=_VMEM_LIMIT,
        ),
    )(a, gamma, beta, w)


def _tanh_l2norm_call(t):
    C, N = t.shape
    tn = _pick_col_tile(N)
    return pl.pallas_call(
        _tanh_l2norm_kernel,
        out_shape=jax.ShapeDtypeStruct((C, N), jnp.float32),
        grid=(N // tn,),
        in_specs=[pl.BlockSpec((C, tn), lambda j: (0, j))],
        out_specs=pl.BlockSpec((C, tn), lambda j: (0, j)),
        compiler_params=pltpu.CompilerParams(
            dimension_semantics=("parallel",),
            vmem_limit_bytes=_VMEM_LIMIT,
        ),
    )(t)


# ---------------------------------------------------------------------------
# XLA glue: overlap-add ("col2im") for ConvTranspose2d(k=4, stride=2, pad=1).
# Pure data movement on tiny tensors; output[oh] += input[ih]*w[kh] with
# oh = 2*ih - 1 + kh.
# ---------------------------------------------------------------------------
def _overlap_add_1d(t, in_axis, k_axis):
    H = t.shape[in_axis]
    k0, k1, k2, k3 = (jax.lax.index_in_dim(t, i, axis=k_axis, keepdims=False)
                      for i in range(4))
    zero = jnp.zeros_like(jax.lax.slice_in_dim(k1, 0, 1, axis=in_axis))
    # even output rows 2m:  tap kh=1 from input m  + tap kh=3 from input m-1
    even = k1 + jnp.concatenate(
        [zero, jax.lax.slice_in_dim(k3, 0, H - 1, axis=in_axis)], axis=in_axis)
    # odd output rows 2m+1: tap kh=2 from input m  + tap kh=0 from input m+1
    odd = k2 + jnp.concatenate(
        [jax.lax.slice_in_dim(k0, 1, H, axis=in_axis), zero], axis=in_axis)
    out = jnp.stack([even, odd], axis=in_axis + 1)
    new_shape = list(even.shape)
    new_shape[in_axis] = 2 * H
    return out.reshape(new_shape)


def _col2im_s2_k4_p1(y, B, H, W, C):
    """Scatter-matmul output (B*H*W, 4*4*C) -> transposed-conv output (B,2H,2W,C)."""
    t = y.reshape(B, H, W, 4, 4, C)                  # columns were (kh, kw, c)
    t = _overlap_add_1d(t, in_axis=1, k_axis=3)      # rows    -> (B, 2H, W, 4, C)
    t = _overlap_add_1d(t, in_axis=2, k_axis=3)      # columns -> (B, 2H, 2W, C)
    return t


# ---------------------------------------------------------------------------
# One-time parameter preparation (hoisted out of the hot path).
# PyTorch ConvTranspose2d weights are (Cin, Cout, kH, kW); repack to
# (Cin, kH*kW*Cout) "scatter" matrices and cast to bf16 for the MXU.
# ---------------------------------------------------------------------------
def prepare_params(raw):
    def scatter_w(w):
        cin = w.shape[0]
        return jnp.transpose(w, (0, 2, 3, 1)).reshape(cin, -1).astype(jnp.bfloat16)

    return {
        "w0r": scatter_w(raw["w0"]),                      # (Cin, 64*C0)
        "w1s": scatter_w(raw["w1"]),                      # (C0, 16*C1)
        "w2s": scatter_w(raw["w2"]),                      # (C1, 16*C2)
        "gamma0": raw["gamma0"].reshape(1, -1).astype(jnp.float32),
        "beta0": raw["beta0"].reshape(1, -1).astype(jnp.float32),
        "gamma1": raw["gamma1"].reshape(1, -1).astype(jnp.float32),
        "beta1": raw["beta1"].reshape(1, -1).astype(jnp.float32),
    }


# ---------------------------------------------------------------------------
# Full forward (equivalent to ConvDecoder.forward, bn=True, norm=True,
# BatchNorm in training mode i.e. batch statistics, bias=False as in the spec).
# ---------------------------------------------------------------------------
def conv_decoder_forward(x_nchw, p):
    B, Cin, Hin, Win = x_nchw.shape
    # TODO(synk): general (non-1x1) spatial input to deconv0 would need the same
    # scatter+overlap-add path as layers 1/2; the decoder use-case is 1x1.
    assert Hin == 1 and Win == 1, "ConvDecoder expects a (B, c_in, 1, 1) feature map"

    C0 = p["gamma0"].shape[-1]
    C1 = p["gamma1"].shape[-1]
    C2 = p["w2s"].shape[1] // 16
    S0 = p["w0r"].shape[1] // C0          # 8*8 = 64 spatial positions after deconv0
    H0 = math.isqrt(S0)

    x_b = x_nchw.reshape(B, Cin).astype(jnp.bfloat16)

    # --- deconv0: direct matmul, lane-dense (B, 64*C0) output -----------------
    y0 = _deconv0_call(x_b, p["w0r"])                      # (B, 64*C0) f32
    a0 = y0.reshape(B * H0 * H0, C0)                       # rows = (b, oh, ow)

    # --- deconv1: BN0+ReLU prologue fused + scatter matmul --------------------
    y1 = _bn_relu_scatter_call(a0, p["gamma0"], p["beta0"], p["w1s"])  # (B*64, 16*C1)
    pre1 = _col2im_s2_k4_p1(y1, B, H0, H0, C1)             # (B, 16, 16, C1)
    a1 = pre1.reshape(B * 2 * H0 * 2 * H0, C1)

    # --- deconv2: BN1+ReLU prologue fused + scatter matmul --------------------
    y2 = _bn_relu_scatter_call(a1, p["gamma1"], p["beta1"], p["w2s"])  # (B*256, 16*C2)
    pre2 = _col2im_s2_k4_p1(y2, B, 2 * H0, 2 * H0, C2)     # (B, 32, 32, C2)

    # --- tanh + per-pixel channel L2 normalize (channels on sublanes) ---------
    Hf = 4 * H0
    t = jnp.transpose(pre2, (3, 0, 1, 2)).reshape(C2, B * Hf * Hf)   # (C2, B*H*W)
    out_t = _tanh_l2norm_call(t)                                      # (C2, B*H*W)
    out = out_t.reshape(C2, B, Hf, Hf).transpose(1, 0, 2, 3)          # NCHW

    return [out]
    # TODO(synk): BatchNorm running_mean/running_var buffer updates (a training
    # side effect, not part of the returned tensor) are not tracked.


if __name__ == "__main__":
    # Small config consistent with the module: ConvDecoder(c_in=64, c_out=3,
    # conv_dim=16); feature-vector input (B, c_in, 1, 1) -> (B, 3, 32, 32).
    B, c_in, conv_dim, c_out = 2, 64, 16, 3
    key = jax.random.PRNGKey(0)
    ks = jax.random.split(key, 8)
    raw_params = {
        "w0": 0.05 * jax.random.normal(ks[0], (c_in, conv_dim * 2, 8, 8), jnp.float32),
        "gamma0": 1.0 + 0.1 * jax.random.normal(ks[1], (conv_dim * 2,), jnp.float32),
        "beta0": 0.1 * jax.random.normal(ks[2], (conv_dim * 2,), jnp.float32),
        "w1": 0.05 * jax.random.normal(ks[3], (conv_dim * 2, conv_dim, 4, 4), jnp.float32),
        "gamma1": 1.0 + 0.1 * jax.random.normal(ks[4], (conv_dim,), jnp.float32),
        "beta1": 0.1 * jax.random.normal(ks[5], (conv_dim,), jnp.float32),
        "w2": 0.05 * jax.random.normal(ks[6], (conv_dim, c_out, 4, 4), jnp.float32),
    }
    x = jax.random.normal(ks[7], (B, c_in, 1, 1), jnp.float32)

    params = prepare_params(raw_params)      # one-time weight repack (hoisted)
    fwd = jax.jit(conv_decoder_forward)
    (out,) = fwd(x, params)
    out = jax.block_until_ready(out)

    assert out.shape == (B, c_out, 32, 32), out.shape
    assert bool(jnp.all(jnp.isfinite(out)))
    # norm=True branch: every pixel's channel vector should have unit L2 norm.
    chan_norm = jnp.sqrt(jnp.sum(out * out, axis=1))
    assert bool(jnp.all(jnp.abs(chan_norm - 1.0) < 1e-3))

    print("KERNEL_OK")
</pallas_src>

<mosaic_0001>
module attributes {stable_mosaic.version = 11 : i64} {
  func.func @_deconv0_matmul_kernel(%arg0: i32, %arg1: memref<2x64xbf16, #tpu.memory_space<vmem>>, %arg2: memref<64x512xbf16, #tpu.memory_space<vmem>>, %arg3: memref<2x512xf32, #tpu.memory_space<vmem>>) attributes {dimension_semantics = [#tpu.dimension_semantics<parallel>], iteration_bounds = array<i64: 4>, scalar_prefetch = 0 : i64, scratch_operands = 0 : i64, tpu.core_type = #tpu.core_type<tc>, window_params = [{pipeline_mode = #tpu.pipeline_mode<synchronous>, transform_indices = @transform_0, window_bounds = array<i64: 2, 64>}, {transform_indices = @transform_1, window_bounds = array<i64: 64, 512>}, {transform_indices = @transform_2, window_bounds = array<i64: 2, 512>}]} {
    %c0 = arith.constant 0 : index
    %c0_0 = arith.constant 0 : index
    %0 = vector.load %arg1[%c0, %c0_0] : memref<2x64xbf16, #tpu.memory_space<vmem>>, vector<2x64xbf16>
    %c0_1 = arith.constant 0 : index
    %c0_2 = arith.constant 0 : index
    %1 = vector.load %arg2[%c0_1, %c0_2] : memref<64x512xbf16, #tpu.memory_space<vmem>>, vector<64x512xbf16>
    %cst = arith.constant dense<0.000000e+00> : vector<2x512xf32>
    %2 = tpu.matmul %0, %1, %cst {dimension_numbers = #tpu.dot_dimension_numbers<[1], [0], [0], [1], [0, 0, 1, 1], [], []>} : vector<2x64xbf16>, vector<64x512xbf16>, vector<2x512xf32> -> vector<2x512xf32>
    %c0_3 = arith.constant 0 : index
    %c0_4 = arith.constant 0 : index
    %3 = vector.load %arg3[%c0_3, %c0_4] : memref<2x512xf32, #tpu.memory_space<vmem>>, vector<2x512xf32>
    tpu.vector_store %arg3[%c0_3, %c0_4], %2 {strides = array<i32>} : memref<2x512xf32, #tpu.memory_space<vmem>>, vector<2x512xf32>,
    return
  }
  func.func @transform_0(%arg0: i32) -> (i32, i32) {
    %c0_i32 = arith.constant 0 : i32
    %c0_i32_0 = arith.constant 0 : i32
    %c0_i32_1 = arith.constant 0 : i32
    return %c0_i32, %c0_i32_0 : i32, i32
  }
  func.func @transform_1(%arg0: i32) -> (i32, i32) {
    %c0_i32 = arith.constant 0 : i32
    %c0_i32_0 = arith.constant 0 : i32
    return %c0_i32, %arg0 : i32, i32
  }
  func.func @transform_2(%arg0: i32) -> (i32, i32) {
    %c0_i32 = arith.constant 0 : i32
    %c0_i32_0 = arith.constant 0 : i32
    return %c0_i32, %arg0 : i32, i32
  }
}

module attributes {stable_mosaic.version = 11 : i64} {
  func.func @_bn_relu_scatter_matmul_kernel(%arg0: i32, %arg1: memref<128x32xf32, #tpu.memory_space<vmem>>, %arg2: memref<1x32xf32, #tpu.memory_space<vmem>>, %arg3: memref<1x32xf32, #tpu.memory_space<vmem>>, %arg4: memref<32x256xbf16, #tpu.memory_space<vmem>>, %arg5: memref<128x256xf32, #tpu.memory_space<vmem>>) attributes {dimension_semantics = [#tpu.dimension_semantics<arbitrary>], iteration_bounds = array<i64: 1>, scalar_prefetch = 0 : i64, scratch_operands = 0 : i64, tpu.core_type = #tpu.core_type<tc>, window_params = [{pipeline_mode = #tpu.pipeline_mode<synchronous>, transform_indices = @transform_0, window_bounds = array<i64: 128, 32>}, {pipeline_mode = #tpu.pipeline_mode<synchronous>, transform_indices = @transform_1, window_bounds = array<i64: 1, 32>}, {pipeline_mode = #tpu.pipeline_mode<synchronous>, transform_indices = @transform_2, window_bounds = array<i64: 1, 32>}, {pipeline_mode = #tpu.pipeline_mode<synchronous>, transform_indices = @transform_3, window_bounds = array<i64: 32, 256>}, {pipeline_mode = #tpu.pipeline_mode<synchronous>, transform_indices = @transform_4, window_bounds = array<i64: 128, 256>}]} {
    %c0 = arith.constant 0 : index
    %c0_0 = arith.constant 0 : index
    %0 = vector.load %arg1[%c0, %c0_0] : memref<128x32xf32, #tpu.memory_space<vmem>>, vector<128x32xf32>
    %cst = arith.constant dense<0.000000e+00> : vector<32xf32>
    %1 = vector.multi_reduction <add>, %0, %cst [0] : vector<128x32xf32> to vector<32xf32>
    %2 = vector.shape_cast %1 : vector<32xf32> to vector<1x32xf32>
    %3 = arith.mulf %0, %0 : vector<128x32xf32>
    %cst_1 = arith.constant dense<0.000000e+00> : vector<32xf32>
    %4 = vector.multi_reduction <add>, %3, %cst_1 [0] : vector<128x32xf32> to vector<32xf32>
    %5 = vector.shape_cast %4 : vector<32xf32> to vector<1x32xf32>
    %cst_2 = arith.constant 7.812500e-03 : f32
    %6 = vector.broadcast %cst_2 : f32 to vector<1x32xf32>
    %7 = arith.mulf %2, %6 : vector<1x32xf32>
    %cst_3 = arith.constant 7.812500e-03 : f32
    %8 = vector.broadcast %cst_3 : f32 to vector<1x32xf32>
    %9 = arith.mulf %5, %8 : vector<1x32xf32>
    %10 = arith.mulf %7, %7 : vector<1x32xf32>
    %11 = arith.subf %9, %10 : vector<1x32xf32>
    %c0_4 = arith.constant 0 : index
    %c0_5 = arith.constant 0 : index
    %12 = vector.load %arg2[%c0_4, %c0_5] : memref<1x32xf32, #tpu.memory_space<vmem>>, vector<1x32xf32>
    %cst_6 = arith.constant 9.99999974E-6 : f32
    %13 = vector.broadcast %cst_6 : f32 to vector<1x32xf32>
    %14 = arith.addf %11, %13 : vector<1x32xf32>
    %15 = math.rsqrt %14 : vector<1x32xf32>
    %16 = arith.mulf %12, %15 : vector<1x32xf32>
    %c0_7 = arith.constant 0 : index
    %c0_8 = arith.constant 0 : index
    %17 = vector.load %arg3[%c0_7, %c0_8] : memref<1x32xf32, #tpu.memory_space<vmem>>, vector<1x32xf32>
    %18 = arith.mulf %7, %16 : vector<1x32xf32>
    %19 = arith.subf %17, %18 : vector<1x32xf32>
    %20 = vector.broadcast %16 : vector<1x32xf32> to vector<128x32xf32>
    %21 = arith.mulf %0, %20 : vector<128x32xf32>
    %22 = vector.broadcast %19 : vector<1x32xf32> to vector<128x32xf32>
    %23 = arith.addf %21, %22 : vector<128x32xf32>
    %cst_9 = arith.constant 0.000000e+00 : f32
    %24 = vector.broadcast %cst_9 : f32 to vector<128x32xf32>
    %25 = arith.maximumf %23, %24 : vector<128x32xf32>
    %26 = arith.truncf %25 : vector<128x32xf32> to vector<128x32xbf16>
    %c0_10 = arith.constant 0 : index
    %c0_11 = arith.constant 0 : index
    %27 = vector.load %arg4[%c0_10, %c0_11] : memref<32x256xbf16, #tpu.memory_space<vmem>>, vector<32x256xbf16>
    %cst_12 = arith.constant dense<0.000000e+00> : vector<128x256xf32>
    %28 = tpu.matmul %26, %27, %cst_12 {dimension_numbers = #tpu.dot_dimension_numbers<[1], [0], [0], [1], [0, 0, 1, 1], [], []>} : vector<128x32xbf16>, vector<32x256xbf16>, vector<128x256xf32> -> vector<128x256xf32>
    %c0_13 = arith.constant 0 : index
    %c0_14 = arith.constant 0 : index
    %29 = vector.load %arg5[%c0_13, %c0_14] : memref<128x256xf32, #tpu.memory_space<vmem>>, vector<128x256xf32>
    tpu.vector_store %arg5[%c0_13, %c0_14], %28 {strides = array<i32>} : memref<128x256xf32, #tpu.memory_space<vmem>>, vector<128x256xf32>,
    return
  }
  func.func @transform_0(%arg0: i32) -> (i32, i32) {
    %c0_i32 = arith.constant 0 : i32
    %c0_i32_0 = arith.constant 0 : i32
    %c0_i32_1 = arith.constant 0 : i32
    return %c0_i32, %c0_i32_0 : i32, i32
  }
  func.func @transform_1(%arg0: i32) -> (i32, i32) {
    %c0_i32 = arith.constant 0 : i32
    %c0_i32_0 = arith.constant 0 : i32
    %c0_i32_1 = arith.constant 0 : i32
    return %c0_i32, %c0_i32_0 : i32, i32
  }
  func.func @transform_2(%arg0: i32) -> (i32, i32) {
    %c0_i32 = arith.constant 0 : i32
    %c0_i32_0 = arith.constant 0 : i32
    %c0_i32_1 = arith.constant 0 : i32
    return %c0_i32, %c0_i32_0 : i32, i32
  }
  func.func @transform_3(%arg0: i32) -> (i32, i32) {
    %c0_i32 = arith.constant 0 : i32
    %c0_i32_0 = arith.constant 0 : i32
    %c0_i32_1 = arith.constant 0 : i32
    return %c0_i32, %c0_i32_0 : i32, i32
  }
  func.func @transform_4(%arg0: i32) -> (i32, i32) {
    %c0_i32 = arith.constant 0 : i32
    %c0_i32_0 = arith.constant 0 : i32
    %c0_i32_1 = arith.constant 0 : i32
    return %c0_i32, %c0_i32_0 : i32, i32
  }
}

module attributes {stable_mosaic.version = 11 : i64} {
  func.func @_bn_relu_scatter_matmul_kernel(%arg0: i32, %arg1: memref<512x16xf32, #tpu.memory_space<vmem>>, %arg2: memref<1x16xf32, #tpu.memory_space<vmem>>, %arg3: memref<1x16xf32, #tpu.memory_space<vmem>>, %arg4: memref<16x48xbf16, #tpu.memory_space<vmem>>, %arg5: memref<512x48xf32, #tpu.memory_space<vmem>>) attributes {dimension_semantics = [#tpu.dimension_semantics<arbitrary>], iteration_bounds = array<i64: 1>, scalar_prefetch = 0 : i64, scratch_operands = 0 : i64, tpu.core_type = #tpu.core_type<tc>, window_params = [{pipeline_mode = #tpu.pipeline_mode<synchronous>, transform_indices = @transform_0, window_bounds = array<i64: 512, 16>}, {pipeline_mode = #tpu.pipeline_mode<synchronous>, transform_indices = @transform_1, window_bounds = array<i64: 1, 16>}, {pipeline_mode = #tpu.pipeline_mode<synchronous>, transform_indices = @transform_2, window_bounds = array<i64: 1, 16>}, {pipeline_mode = #tpu.pipeline_mode<synchronous>, transform_indices = @transform_3, window_bounds = array<i64: 16, 48>}, {pipeline_mode = #tpu.pipeline_mode<synchronous>, transform_indices = @transform_4, window_bounds = array<i64: 512, 48>}]} {
    %c0 = arith.constant 0 : index
    %c0_0 = arith.constant 0 : index
    %0 = vector.load %arg1[%c0, %c0_0] : memref<512x16xf32, #tpu.memory_space<vmem>>, vector<512x16xf32>
    %cst = arith.constant dense<0.000000e+00> : vector<16xf32>
    %1 = vector.multi_reduction <add>, %0, %cst [0] : vector<512x16xf32> to vector<16xf32>
    %2 = vector.shape_cast %1 : vector<16xf32> to vector<1x16xf32>
    %3 = arith.mulf %0, %0 : vector<512x16xf32>
    %cst_1 = arith.constant dense<0.000000e+00> : vector<16xf32>
    %4 = vector.multi_reduction <add>, %3, %cst_1 [0] : vector<512x16xf32> to vector<16xf32>
    %5 = vector.shape_cast %4 : vector<16xf32> to vector<1x16xf32>
    %cst_2 = arith.constant 0.001953125 : f32
    %6 = vector.broadcast %cst_2 : f32 to vector<1x16xf32>
    %7 = arith.mulf %2, %6 : vector<1x16xf32>
    %cst_3 = arith.constant 0.001953125 : f32
    %8 = vector.broadcast %cst_3 : f32 to vector<1x16xf32>
    %9 = arith.mulf %5, %8 : vector<1x16xf32>
    %10 = arith.mulf %7, %7 : vector<1x16xf32>
    %11 = arith.subf %9, %10 : vector<1x16xf32>
    %c0_4 = arith.constant 0 : index
    %c0_5 = arith.constant 0 : index
    %12 = vector.load %arg2[%c0_4, %c0_5] : memref<1x16xf32, #tpu.memory_space<vmem>>, vector<1x16xf32>
    %cst_6 = arith.constant 9.99999974E-6 : f32
    %13 = vector.broadcast %cst_6 : f32 to vector<1x16xf32>
    %14 = arith.addf %11, %13 : vector<1x16xf32>
    %15 = math.rsqrt %14 : vector<1x16xf32>
    %16 = arith.mulf %12, %15 : vector<1x16xf32>
    %c0_7 = arith.constant 0 : index
    %c0_8 = arith.constant 0 : index
    %17 = vector.load %arg3[%c0_7, %c0_8] : memref<1x16xf32, #tpu.memory_space<vmem>>, vector<1x16xf32>
    %18 = arith.mulf %7, %16 : vector<1x16xf32>
    %19 = arith.subf %17, %18 : vector<1x16xf32>
    %20 = vector.broadcast %16 : vector<1x16xf32> to vector<512x16xf32>
    %21 = arith.mulf %0, %20 : vector<512x16xf32>
    %22 = vector.broadcast %19 : vector<1x16xf32> to vector<512x16xf32>
    %23 = arith.addf %21, %22 : vector<512x16xf32>
    %cst_9 = arith.constant 0.000000e+00 : f32
    %24 = vector.broadcast %cst_9 : f32 to vector<512x16xf32>
    %25 = arith.maximumf %23, %24 : vector<512x16xf32>
    %26 = arith.truncf %25 : vector<512x16xf32> to vector<512x16xbf16>
    %c0_10 = arith.constant 0 : index
    %c0_11 = arith.constant 0 : index
    %27 = vector.load %arg4[%c0_10, %c0_11] : memref<16x48xbf16, #tpu.memory_space<vmem>>, vector<16x48xbf16>
    %cst_12 = arith.constant dense<0.000000e+00> : vector<512x48xf32>
    %28 = tpu.matmul %26, %27, %cst_12 {dimension_numbers = #tpu.dot_dimension_numbers<[1], [0], [0], [1], [0, 0, 1, 1], [], []>} : vector<512x16xbf16>, vector<16x48xbf16>, vector<512x48xf32> -> vector<512x48xf32>
    %c0_13 = arith.constant 0 : index
    %c0_14 = arith.constant 0 : index
    %29 = vector.load %arg5[%c0_13, %c0_14] : memref<512x48xf32, #tpu.memory_space<vmem>>, vector<512x48xf32>
    tpu.vector_store %arg5[%c0_13, %c0_14], %28 {strides = array<i32>} : memref<512x48xf32, #tpu.memory_space<vmem>>, vector<512x48xf32>,
    return
  }
  func.func @transform_0(%arg0: i32) -> (i32, i32) {
    %c0_i32 = arith.constant 0 : i32
    %c0_i32_0 = arith.constant 0 : i32
    %c0_i32_1 = arith.constant 0 : i32
    return %c0_i32, %c0_i32_0 : i32, i32
  }
  func.func @transform_1(%arg0: i32) -> (i32, i32) {
    %c0_i32 = arith.constant 0 : i32
    %c0_i32_0 = arith.constant 0 : i32
    %c0_i32_1 = arith.constant 0 : i32
    return %c0_i32, %c0_i32_0 : i32, i32
  }
  func.func @transform_2(%arg0: i32) -> (i32, i32) {
    %c0_i32 = arith.constant 0 : i32
    %c0_i32_0 = arith.constant 0 : i32
    %c0_i32_1 = arith.constant 0 : i32
    return %c0_i32, %c0_i32_0 : i32, i32
  }
  func.func @transform_3(%arg0: i32) -> (i32, i32) {
    %c0_i32 = arith.constant 0 : i32
    %c0_i32_0 = arith.constant 0 : i32
    %c0_i32_1 = arith.constant 0 : i32
    return %c0_i32, %c0_i32_0 : i32, i32
  }
  func.func @transform_4(%arg0: i32) -> (i32, i32) {
    %c0_i32 = arith.constant 0 : i32
    %c0_i32_0 = arith.constant 0 : i32
    %c0_i32_1 = arith.constant 0 : i32
    return %c0_i32, %c0_i32_0 : i32, i32
  }
}

module attributes {stable_mosaic.version = 11 : i64} {
  func.func @_tanh_l2norm_kernel(%arg0: i32, %arg1: memref<3x512xf32, #tpu.memory_space<vmem>>, %arg2: memref<3x512xf32, #tpu.memory_space<vmem>>) attributes {dimension_semantics = [#tpu.dimension_semantics<parallel>], iteration_bounds = array<i64: 4>, scalar_prefetch = 0 : i64, scratch_operands = 0 : i64, tpu.core_type = #tpu.core_type<tc>, window_params = [{transform_indices = @transform_0, window_bounds = array<i64: 3, 512>}, {transform_indices = @transform_1, window_bounds = array<i64: 3, 512>}]} {
    %c0 = arith.constant 0 : index
    %c0_0 = arith.constant 0 : index
    %0 = vector.load %arg1[%c0, %c0_0] : memref<3x512xf32, #tpu.memory_space<vmem>>, vector<3x512xf32>
    %1 = math.tanh %0 : vector<3x512xf32>
    %2 = arith.mulf %1, %1 : vector<3x512xf32>
    %cst = arith.constant dense<0.000000e+00> : vector<512xf32>
    %3 = vector.multi_reduction <add>, %2, %cst [0] : vector<3x512xf32> to vector<512xf32>
    %4 = vector.shape_cast %3 : vector<512xf32> to vector<1x512xf32>
    %5 = math.sqrt %4 : vector<1x512xf32>
    %cst_1 = arith.constant 0.000000e+00 : f32
    %6 = vector.broadcast %cst_1 : f32 to vector<1x512xf32>
    %7 = arith.cmpf oeq, %5, %6 : vector<1x512xf32>
    %8 = arith.extui %7 : vector<1x512xi1> to vector<1x512xi32>
    %9 = arith.sitofp %8 : vector<1x512xi32> to vector<1x512xf32>
    %10 = arith.addf %5, %9 : vector<1x512xf32>
    %11 = vector.broadcast %10 : vector<1x512xf32> to vector<3x512xf32>
    %12 = arith.divf %1, %11 : vector<3x512xf32>
    %c0_2 = arith.constant 0 : index
    %c0_3 = arith.constant 0 : index
    %13 = vector.load %arg2[%c0_2, %c0_3] : memref<3x512xf32, #tpu.memory_space<vmem>>, vector<3x512xf32>
    tpu.vector_store %arg2[%c0_2, %c0_3], %12 {strides = array<i32>} : memref<3x512xf32, #tpu.memory_space<vmem>>, vector<3x512xf32>,
    return
  }
  func.func @transform_0(%arg0: i32) -> (i32, i32) {
    %c0_i32 = arith.constant 0 : i32
    %c0_i32_0 = arith.constant 0 : i32
    return %c0_i32, %arg0 : i32, i32
  }
  func.func @transform_1(%arg0: i32) -> (i32, i32) {
    %c0_i32 = arith.constant 0 : i32
    %c0_i32_0 = arith.constant 0 : i32
    return %c0_i32, %arg0 : i32, i32
  }
}

</mosaic_0001>

<bundles_post_ra>
// kernel: conv_decoder_forward.4
= control target key start
LH: loop header
LB: loop body
LE: loop exit
PB: predicated region body
PF: predicated region fallthrough
CT: control target
= control target key end

     0   :  { %7 = vsyncpa [#allocation3], 0  ;;  %s753_s0 = inlined_call_operand.vmem [shape: bf16[2,64], index: 0, kind: input, shape index: {}]   ;;  %s754_s1 = inlined_call_operand.hbm [shape: bf16[64,2048], index: 1, kind: input, shape index: {}]   ;;  %s755_s2 = inlined_call_operand.vmem [shape: f32[2,2048], index: 2, kind: output, shape index: {}]  }
   0x1   :  { %9 = vsyncpa [#allocation3 + $0x1], 0  ;;  %s627_s9 = smov 0   ;;  %s629_s10 = smov 0  }
   0x2   :  { %s631_s11 = smov 0   ;;  %s633_s12 = smov 0  }
   0x3 LB: > { %s440_s13 = sadd.s32 4294967295, %s604_s12   ;;  %s647_s14 = sadd.s32 1, %s604_s12   ;;  %s604_s12 = sphi %s633_s12, %s761_s12   ;;  %s600_s11 = sphi %s631_s11, %s760_s11   ;;  %s596_s10 = sphi %s629_s10, %s759_s10   ;;  %s592_s9 = sphi %s627_s9, %s758_s9  }
   0x4   : > { %s40_s15 = ssub.s32 %s604_s12, %s647_s14  ;;  %s43_s16 = sadd.s32 1, %s600_s11 }
   0x5   : > { %p41_p0 = scmp.eq.s32.totalorder %s40_s15, 0  ;;  %p50_p1 = scmp.ne.s32.totalorder %s600_s11, %s596_s10 }
   0x6   : > { %p51_p2 = scmp.eq.s32.totalorder %s604_s12, 0  ;;  %p56_p3 = scmp.ne.s32.totalorder %s596_s10, %s592_s9 }
   0x7   : > { %s657_s17 = scalar_select %p41_p0, %s600_s11, %s43_s16  }
   0x8   : > { %p52_p4 = por %p51_p2, %p50_p1  ;;  %p57_p5 = scmp.eq.s32.totalorder %s440_s13, 0 }
   0x9   : > { %p478_p6 = scmp.lt.s32.totalorder %s604_s12, 4  ;;  %s109_s19 = sand.u32 1, %s600_s11  }
   0xa   : > { %p662_p7 = por %p57_p5, %p56_p3  ;;  %s444_s20 = sshll.u32 %s109_s19, 7 }
   0xb   : > { %s471_s21 = sshll.u32 %s604_s12, 8  ;;  %s113_s25 = scalar_lea.vmem [#allocation2], %s444_s20 }
   0xc   : > { %s671_s24 = scalar_lea.hbm %s754_s1, %s471_s21  ;;  %s120_s26 = sshll.u32 %s113_s25, 4  ;;  %s673_s26 = int_to_ptr.vmem [resolvable:$true] %s120_s26 }
   0xd   : > { %p675_p8 = pnand %p478_p6, %p52_p4  ;;  %s679_s28 = scalar_lea.sflag [#allocation3], %s109_s19 }
   0xe   : > { %s540_s29 = scalar_lea.hbm %s671_s24, 2048  ;;  %s545_s4 = scalar_lea.hbm %s754_s1, 8192 }
   0xf   : > { %p541_p9 = scmp.ne.s32.totalorder %s671_s24, %s540_s29  ;;  %p542_p10 = pneg %p675_p8 }
  0x10   : > { %p546_p13 = scmp.lt.u32.totalorder %s671_s24, %s754_s1  ;;  %p547_p0 = scmp.lt.u32.totalorder %s545_s4, %s540_s29 }
  0x11   : > { %p543_p11 = pnand %p542_p10, %p541_p9  ;;  %p549_p2 = scmp.lt.u32.totalorder %s540_s29, %s671_s24 }
  0x12   : > { %p548_p1 = por %p547_p0, %p546_p13 }
  0x13   : > { %p544_p12 = pneg %p543_p11 }
  0x14   : > { %p550_p3 = por %p549_p2, %p548_p1 }
  0x16   : > { %p551_p4 = pnand %p550_p3, %p544_p12 }
  0x18   : > { %554 = shalt.err (!%p551_p4)
}
  0x19   : > { %s555_s7 = scalar_lea.vmem %s673_s26, 2048  ;;  %s606_s8 = smov [#allocation2]  }
  0x1a   : > { %p556_p5 = scmp.ne.s32.totalorder %s673_s26, %s555_s7  ;;  %s560_s9 = sshll.u32 %s606_s8, 4  ;;  %s561_s9 = int_to_ptr.vmem [resolvable:$false] %s560_s9 }
  0x1b   : > { %s562_s15 = scalar_lea.vmem %s561_s9, 4096  ;;  %p563_p11 = scmp.lt.s32.totalorder %s673_s26, %s561_s9 }
  0x1c   : > { %p558_p6 = pnand %p556_p5, %p542_p10  ;;  %p564_p13 = scmp.lt.s32.totalorder %s562_s15, %s555_s7 }
  0x1e   : > { %p559_p9 = pneg %p558_p6  ;;  %p565_p0 = por %p564_p13, %p563_p11 }
  0x20   : > { %p566_p1 = pnand %p565_p0, %p559_p9 }
  0x22   : > { %569 = shalt.err (!%p566_p1)
}
  0x23   : > { %s607_s16 = smov 1024   ;;  %s608_s19 = smov 256  }
  0x24   : > { %s609_s20 = smov 16   ;;  %p447_p10 = scmp.ge.s32.totalorder %s604_s12, 1 }
  0x25   : > { %477 = dma.hbm_to_vmem [thread:$0]  (!%p675_p8), %s671_s24, 2048, %s673_s26, %s679_s28, %s607_s16, %s608_s19, %s609_s20  }
  0x26   : > { %p128_p12 = scmp.lt.s32.totalorder %s604_s12, 5 }
  0x28   : > { %p129_p2 = pnand %p447_p10, %p128_p12 }
  0x29   : > { %s134_s21 = sand.u32 (!%p129_p2), 1, %s596_s10  }
  0x2a   : > { %132 = sbr.rel (%p129_p2) target bundleno = 288 (0x120), region = 28  ;;  %s448_s22 = sshll.u32 (!%p129_p2), %s134_s21, 7 }
  0x2b   : > { %s135_s23 = scalar_lea.sflag (!%p129_p2), [#allocation3], %s134_s21  ;;  %s710_s25 = scalar_lea.vmem (!%p129_p2), [#allocation2], %s448_s22 }
  0x31   : > { %587 = dma.done.wait (%p662_p7), %s135_s23, 2048  }
  0x32   : > { %589 = vsyncadd (%p662_p7), %s135_s23, 4294965248  ;;  %v610_v0 = vmov 0   ;;  %v516_v1 = vld [vmem:[%s710_s25 + $0x4] ss:$16 sps:$4 sm:$0xff]   ;;  %v518_v2 = vld [vmem:[%s710_s25 + $0xc] ss:$16 sps:$4 sm:$0xff]   ;;  %v359_v20 = vlaneseq }
  0x33   : > { %300 = vmatprep.mubr.bf16.mxu0 %v610_v0  ;;  %341 = vmatprep.mubr.bf16.mxu1 %v610_v0  ;;  %v520_v3 = vld [vmem:[%s710_s25] ss:$16 sps:$4 sm:$0xff]   ;;  %v521_v4 = vld [vmem:[%s710_s25 + $0x8] ss:$16 sps:$4 sm:$0xff]   ;;  %v522_v5 = vld [vmem:[%s710_s25 + $0x24] ss:$16 sps:$4 sm:$0xff]  }
  0x34   : > { %268 = vmatprep.subr.bf16.mxu0 %v516_v1  ;;  %309 = vmatprep.subr.bf16.mxu1 %v518_v2  ;;  %v524_v6 = vld [vmem:[%s710_s25 + $0x2c] ss:$16 sps:$4 sm:$0xff]   ;;  %v526_v7 = vld [vmem:[%s710_s25 + $0x20] ss:$16 sps:$4 sm:$0xff]   ;;  %v527_v8 = vld [vmem:[%s710_s25 + $0x28] ss:$16 sps:$4 sm:$0xff]  }
  0x35   : > { %269 = vmatpush1.bf16.msra.mxu0 %v520_v3  ;;  %310 = vmatpush1.bf16.msra.mxu1 %v521_v4  ;;  %v528_v9 = vld [vmem:[%s710_s25 + $0x44] ss:$16 sps:$4 sm:$0xff]   ;;  %v530_v10 = vld [vmem:[%s710_s25 + $0x4c] ss:$16 sps:$4 sm:$0xff]   ;;  %v532_v11 = vld [vmem:[%s710_s25 + $0x40] ss:$16 sps:$4 sm:$0xff]  }
  0x36   : > { %270 = vmatprep.subr.bf16.mxu0 %v522_v5  ;;  %311 = vmatprep.subr.bf16.mxu1 %v524_v6  ;;  %v533_v12 = vld [vmem:[%s710_s25 + $0x48] ss:$16 sps:$4 sm:$0xff]   ;;  %v534_v13 = vld [vmem:[%s710_s25 + $0x64] ss:$16 sps:$4 sm:$0xff]   ;;  %v536_v14 = vld [vmem:[%s710_s25 + $0x6c] ss:$16 sps:$4 sm:$0xff]  }
  0x37   : > { %v538_v15 = vld [vmem:[%s710_s25 + $0x60] ss:$16 sps:$4 sm:$0xff]   ;;  %v539_v16 = vld [vmem:[%s710_s25 + $0x68] ss:$16 sps:$4 sm:$0xff]   ;;  %vm264_vm0 = vcmask 523264   ;;  %s449_s26 = sshll.u32 %s440_s13, 2 }
  0x38   : > { %v167_v17 = vld [vmem:[%s753_s0] sm:$0x1]  ;;  %v611_v18 = vmov 1983009808   ;;  %p161_p7 = scmp.lt.s32.totalorder %s449_s26, 15  ;;  %v360_v22 = vshrl.u32 %v359_v20, 7 }
  0x39   : > { %271 = vmatpush1.bf16.msra.mxu0 %v526_v7  ;;  %312 = vmatpush1.bf16.msra.mxu1 %v527_v8  ;;  %v357_v19 = vunpack.c.l.s4 %v611_v18 }
  0x3a   : > { %272 = vmatprep.subr.bf16.mxu0 %v528_v9  ;;  %313 = vmatprep.subr.bf16.mxu1 %v530_v10  ;;  %s763_s26 = smov (!%p161_p7, %s449_s26), 15 }
  0x3b   : > { %v358_v21 = vunpack.c.0.s8 %v357_v19  ;;  %s450_s27 = sshll.u32 %s763_s26, 1 }
  0x3c   : > { %s164_s28 = scalar_lea.vmem %s755_s2, %s450_s27 }
  0x3d   : > { %273 = vmatpush1.bf16.msra.mxu0 %v532_v11  ;;  %314 = vmatpush1.bf16.msra.mxu1 %v533_v12  ;;  %v361_v25 = vsub.s32 %v358_v21, %v360_v22 }
  0x3e   : > { %274 = vmatprep.subr.bf16.mxu0 %v534_v13  ;;  %315 = vmatprep.subr.bf16.mxu1 %v536_v14 }
  0x41   : > { %275 = vmatpush1.bf16.msra.mxu0 %v538_v15  ;;  %316 = vmatpush1.bf16.msra.mxu1 %v539_v16 }
  0x44   : > { %467 = vmatmul.mubr.msk.bf16.vlgmr.msra.gmra.mrb[0].mxu0 %vm264_vm0, %v167_v17  ;;  %468 = vmatmul.mubr.msk.bf16.vlgmr.msra.gmra.mrb[0].mxu1 %vm264_vm0, %v167_v17 }
 0x117   : > { %v302_v23 = vpop.f32.mrb[0].mxu0  ;;  %v343_v24 = vpop.f32.mrb[0].mxu1 }
 0x118   : > { %v304_v26 = vpop.f32.mrb[1].mxu0  ;;  %v345_v27 = vpop.f32.mrb[1].mxu1 }
 0x119   : > { %v354_v28 = vcombine.low %v302_v23, %v304_v26  ;;  %v355_v29 = vcombine.low %v343_v24, %v345_v27  ;;  %v306_v30 = vpop.f32.mrb[2].mxu0  ;;  %v347_v31 = vpop.f32.mrb[2].mxu1 }
 0x11a   : > { %v307_v32 = vpop.f32.mrb[3].mxu0  ;;  %v348_v33 = vpop.f32.mrb[3].mxu1 }
 0x11b   : > { %v362_v34 = vrot.slane %v354_v28, %v361_v25  ;;  %v369_v35 = vrot.slane %v355_v29, %v361_v25 }
 0x11d   : > { %v370_v36 = vcombine.low %v362_v34, %v369_v35 }
 0x11f   : > { %372 = vst [vmem:[%s164_s28] sm:$0xff] %v370_v36 }
 0x120 PF: > { %p12_p8 = scmp.ge.s32.totalorder %s647_s14, 6   ;;  %s758_s9 = smov %s596_s10 }
 0x121   : > { %s759_s10 = smov %s600_s11  ;;  %s760_s11 = smov %s657_s17 }
 0x122   : > { %s761_s12 = smov %s647_s14  ;;  %14 = sbr.rel (!%p12_p8) target bundleno = 3 (0x3), region = 68 }
 0x129   :  { %395 = vsyncpa [#allocation3], 1 }
 0x12a   :  { %397 = vsyncpa [#allocation3 + $0x1], 1 }

// kernel: conv_decoder_forward.5
= control target key start
LH: loop header
LB: loop body
LE: loop exit
PB: predicated region body
PF: predicated region fallthrough
CT: control target
= control target key end

     0   :  { %v426_v1 = vmov 0   ;;  %vm34_vm0 = vcmask 261120   ;;  %s758_s3 = inlined_call_operand.vmem [shape: bf16[32,256], index: 3, kind: input, shape index: {}]   ;;  %s759_s0 = inlined_call_operand.vmem [shape: f32[128,32], index: 0, kind: input, shape index: {}]   ;;  %s760_s1 = inlined_call_operand.vmem [shape: f32[1,32], index: 1, kind: input, shape index: {}]   ;;  %s761_s2 = inlined_call_operand.vmem [shape: f32[1,32], index: 2, kind: input, shape index: {}]   ;;  %s762_s4 = inlined_call_operand.vmem [shape: f32[128,256], index: 4, kind: output, shape index: {}]  }
   0x1   :  { %v418_v0 = vld [vmem:[%s758_s3 + $0x4] ss:$8 sps:$4 sm:$0xff]   ;;  %284 = vmatprep.mubr.bf16.mxu0 %v426_v1  ;;  %324 = vmatprep.mubr.bf16.mxu1 %v426_v1  ;;  %v420_v2 = vld [vmem:[%s758_s3] ss:$8 sps:$4 sm:$0xff]   ;;  %v421_v3 = vld [vmem:[%s758_s3 + $0x14] ss:$8 sps:$4 sm:$0xff]  }
   0x2   :  { %252 = vmatprep.subr.bf16.mxu0 %v418_v0  ;;  %413 = vmatprep.subr.bf16.mxu1 %v418_v0  ;;  %v423_v4 = vld [vmem:[%s758_s3 + $0x10] ss:$8 sps:$4 sm:$0xff]   ;;  %v469_v5 = vld [vmem:[%s759_s0] sm:$0xff]  ;;  %v474_v6 = vld [vmem:[%s759_s0 + $0x8] sm:$0xff] }
   0x3   :  { %253 = vmatpush1.bf16.msra.mxu0 %v420_v2  ;;  %415 = vmatpush1.bf16.msra.mxu1 %v420_v2  ;;  %v479_v7 = vld [vmem:[%s759_s0 + $0x10] sm:$0xff]  ;;  %v484_v8 = vld [vmem:[%s759_s0 + $0x18] sm:$0xff]  ;;  %v35_v9 = vsel %vm34_vm0, %v469_v5, 0.0  ;;  %v36_v10 = vsel %vm34_vm0, %v474_v6, 0.0  ;;  %v495_v12 = vld [vmem:[%s759_s0 + $0x20] sm:$0xff]  ;;  %v72_v18 = vmul.f32 %v469_v5, %v469_v5  ;;  %v73_v19 = vmul.f32 %v474_v6, %v474_v6 }
   0x4   :  { %254 = vmatprep.subr.bf16.mxu0 %v421_v3  ;;  %414 = vmatprep.subr.bf16.mxu1 %v421_v3  ;;  %v38_v11 = vsel %vm34_vm0, %v479_v7, 0.0  ;;  %v37_v13 = vadd.f32 %v36_v10, %v35_v9  ;;  %v40_v14 = vsel %vm34_vm0, %v484_v8, 0.0  ;;  %v502_v15 = vld [vmem:[%s759_s0 + $0x28] sm:$0xff]  ;;  %v42_v17 = vsel %vm34_vm0, %v495_v12, 0.0  ;;  %v513_v20 = vld [vmem:[%s759_s0 + $0x30] sm:$0xff]  ;;  %v524_v25 = vld [vmem:[%s759_s0 + $0x38] sm:$0xff] }
   0x5   :  { %v74_v22 = vmul.f32 %v479_v7, %v479_v7  ;;  %v44_v23 = vsel %vm34_vm0, %v502_v15, 0.0  ;;  %v75_v24 = vmul.f32 %v484_v8, %v484_v8  ;;  %v46_v27 = vsel %vm34_vm0, %v513_v20, 0.0  ;;  %v535_v31 = vld [vmem:[%s759_s0 + $0x40] sm:$0xff]  ;;  %v546_v38 = vld [vmem:[%s759_s0 + $0x48] sm:$0xff]  ;;  %v556_v44 = vld [vmem:[%s759_s0 + $0x50] sm:$0xff] }
   0x6   :  { %v39_v16 = vadd.f32 %v38_v11, %v37_v13  ;;  %v76_v28 = vmul.f32 %v495_v12, %v495_v12  ;;  %v88_v29 = vsel %vm34_vm0, %v72_v18, 0.0  ;;  %v89_v30 = vsel %vm34_vm0, %v73_v19, 0.0  ;;  %v566_v50 = vld [vmem:[%s759_s0 + $0x58] sm:$0xff]  ;;  %v576_v56 = vld [vmem:[%s759_s0 + $0x60] sm:$0xff]  ;;  %v586_v62 = vld [vmem:[%s759_s0 + $0x68] sm:$0xff] }
   0x7   :  { %255 = vmatpush1.bf16.msra.mxu0 %v423_v4  ;;  %416 = vmatpush1.bf16.msra.mxu1 %v423_v4  ;;  %v90_v33 = vadd.f32 %v89_v30, %v88_v29  ;;  %v91_v34 = vsel %vm34_vm0, %v74_v22, 0.0  ;;  %v48_v35 = vsel %vm34_vm0, %v524_v25, 0.0  ;;  %v77_v36 = vmul.f32 %v502_v15, %v502_v15  ;;  %v596_v9 = vld [vmem:[%s759_s0 + $0x70] sm:$0xff] }
   0x8   :  { %v41_v21 = vadd.f32 %v40_v14, %v39_v16  ;;  %v93_v37 = vsel %vm34_vm0, %v75_v24, 0.0  ;;  %v50_v41 = vsel %vm34_vm0, %v535_v31, 0.0  ;;  %v78_v42 = vmul.f32 %v513_v20, %v513_v20 }
   0x9   :  { %v92_v40 = vadd.f32 %v91_v34, %v90_v33  ;;  %v95_v43 = vsel %vm34_vm0, %v76_v28, 0.0  ;;  %v52_v47 = vsel %vm34_vm0, %v546_v38, 0.0  ;;  %v79_v48 = vmul.f32 %v524_v25, %v524_v25 }
   0xa   :  { %v43_v26 = vadd.f32 %v42_v17, %v41_v21  ;;  %v97_v49 = vsel %vm34_vm0, %v77_v36, 0.0  ;;  %v54_v53 = vsel %vm34_vm0, %v556_v44, 0.0  ;;  %v80_v54 = vmul.f32 %v535_v31, %v535_v31  ;;  %v606_v17 = vld [vmem:[%s759_s0 + $0x78] sm:$0xff] }
   0xb   :  { %v94_v46 = vadd.f32 %v93_v37, %v92_v40  ;;  %v99_v55 = vsel %vm34_vm0, %v78_v42, 0.0  ;;  %v56_v59 = vsel %vm34_vm0, %v566_v50, 0.0  ;;  %v81_v60 = vmul.f32 %v546_v38, %v546_v38 }
   0xc   :  { %v45_v32 = vadd.f32 %v44_v23, %v43_v26  ;;  %v101_v61 = vsel %vm34_vm0, %v79_v48, 0.0  ;;  %v58_v2 = vsel %vm34_vm0, %v576_v56, 0.0  ;;  %v82_v3 = vmul.f32 %v556_v44, %v556_v44 }
   0xd   :  { %v96_v52 = vadd.f32 %v95_v43, %v94_v46  ;;  %v103_v4 = vsel %vm34_vm0, %v80_v54, 0.0  ;;  %v60_v13 = vsel %vm34_vm0, %v586_v62, 0.0  ;;  %v83_v14 = vmul.f32 %v566_v50, %v566_v50 }
   0xe   :  { %v47_v39 = vadd.f32 %v46_v27, %v45_v32  ;;  %v105_v16 = vsel %vm34_vm0, %v81_v60, 0.0  ;;  %v62_v21 = vsel %vm34_vm0, %v596_v9, 0.0  ;;  %v84_v22 = vmul.f32 %v576_v56, %v576_v56 }
   0xf   :  { %v98_v58 = vadd.f32 %v97_v49, %v96_v52  ;;  %v107_v23 = vsel %vm34_vm0, %v82_v3, 0.0  ;;  %v64_v27 = vsel %vm34_vm0, %v606_v17, 0.0  ;;  %v85_v28 = vmul.f32 %v586_v62, %v586_v62 }
  0x10   :  { %v49_v45 = vadd.f32 %v48_v35, %v47_v39  ;;  %v109_v29 = vsel %vm34_vm0, %v83_v14, 0.0  ;;  %v86_v33 = vmul.f32 %v596_v9, %v596_v9  ;;  %v111_v34 = vsel %vm34_vm0, %v84_v22, 0.0 }
  0x11   :  { %v100_v0 = vadd.f32 %v99_v55, %v98_v58  ;;  %v87_v37 = vmul.f32 %v606_v17, %v606_v17  ;;  %v113_v39 = vsel %vm34_vm0, %v85_v28, 0.0 }
  0x12   :  { %v51_v51 = vadd.f32 %v50_v41, %v49_v45  ;;  %v115_v42 = vsel %vm34_vm0, %v86_v33, 0.0 }
  0x13   :  { %v102_v11 = vadd.f32 %v101_v61, %v100_v0  ;;  %v117_v46 = vsel %vm34_vm0, %v87_v37, 0.0 }
  0x14   :  { %v53_v57 = vadd.f32 %v52_v47, %v51_v51 }
  0x15   :  { %v104_v19 = vadd.f32 %v103_v4, %v102_v11  ;;  %v137_v4 = vlaneseq  ;;  %v129_v11 = vld [vmem:[%s760_s1] sm:$0x1] }
  0x16   :  { %v55_v63 = vadd.f32 %v54_v53, %v53_v57 }
  0x17   :  { %v106_v26 = vadd.f32 %v105_v16, %v104_v19 }
  0x18   :  { %v57_v10 = vadd.f32 %v56_v59, %v55_v63 }
  0x19   :  { %v108_v32 = vadd.f32 %v107_v23, %v106_v26 }
  0x1a   :  { %v59_v18 = vadd.f32 %v58_v2, %v57_v10  ;;  %v138_v10 = vshrl.u32 %v137_v4, 7 }
  0x1b   :  { %v110_v36 = vadd.f32 %v109_v29, %v108_v32 }
  0x1c   :  { %v61_v24 = vadd.f32 %v60_v13, %v59_v18  ;;  %v139_v13 = vsub.s32 0, %v138_v10  ;;  %v133_v18 = vld [vmem:[%s761_s2] sm:$0x1] }
  0x1d   :  { %v112_v41 = vadd.f32 %v111_v34, %v110_v36 }
  0x1e   :  { %v63_v30 = vadd.f32 %v62_v21, %v61_v24 }
  0x1f   :  { %v114_v45 = vadd.f32 %v113_v39, %v112_v41 }
  0x20   :  { %v65_v35 = vadd.f32 %v64_v27, %v63_v30 }
  0x21   :  { %v116_v48 = vadd.f32 %v115_v42, %v114_v45 }
  0x22   :  { %v66_v40 = vrot.slane %v65_v35, 4 }
  0x23   :  { %v118_v51 = vadd.f32 %v117_v46, %v116_v48 }
  0x24   :  { %v67_v43 = vadd.f32 %v66_v40, %v65_v35 }
  0x25   :  { %v119_v53 = vrot.slane %v118_v51, 4 }
  0x26   :  { %v68_v47 = vrot.slane %v67_v43, 2 }
  0x27   :  { %v120_v55 = vadd.f32 %v119_v53, %v118_v51 }
  0x28   :  { %v69_v49 = vadd.f32 %v68_v47, %v67_v43 }
  0x29   :  { %v121_v57 = vrot.slane %v120_v55, 2 }
  0x2a   :  { %v70_v52 = vrot.slane %v69_v49, 1 }
  0x2b   :  { %v122_v58 = vadd.f32 %v121_v57, %v120_v55 }
  0x2c   :  { %v71_v54 = vadd.f32 %v70_v52, %v69_v49 }
  0x2d   :  { %v123_v60 = vrot.slane %v122_v58, 1 }
  0x2e   :  { %v125_v59 = vmul.f32 0.0078125, %v71_v54 }
  0x2f   :  { %v124_v61 = vadd.f32 %v123_v60, %v122_v58 }
  0x30   :  { %v127_v63 = vmul.f32 %v125_v59, %v125_v59 }
  0x31   :  { %v126_v0 = vmul.f32 0.0078125, %v124_v61 }
  0x33   :  { %v128_v2 = vsub.f32 %v126_v0, %v127_v63 }
  0x35   :  { %v130_v3 = vadd.f32 1e-05, %v128_v2 }
  0x37   :  { %424 = vrsqrt.f32 %v130_v3 }
  0x41   :  { %v425_v14 = vpop.eup %424 }
  0x42   :  { %v132_v16 = vmul.f32 %v425_v14, %v129_v11 }
  0x44   :  { %v134_v19 = vmul.f32 %v132_v16, %v125_v59  ;;  %v140_v21 = vrot.slane %v132_v16, %v139_v13 }
  0x46   :  { %v135_v22 = vsub.f32 %v133_v18, %v134_v19  ;;  %v142_v23 = vmul.f32 %v140_v21, %v469_v5  ;;  %v143_v24 = vmul.f32 %v140_v21, %v474_v6  ;;  %v150_v26 = vmul.f32 %v140_v21, %v535_v31 }
  0x47   :  { %v151_v27 = vmul.f32 %v140_v21, %v546_v38  ;;  %v144_v28 = vmul.f32 %v140_v21, %v479_v7  ;;  %v145_v29 = vmul.f32 %v140_v21, %v484_v8  ;;  %v152_v30 = vmul.f32 %v140_v21, %v556_v44 }
  0x48   :  { %v162_v32 = vrot.slane %v135_v22, %v139_v13  ;;  %v153_v33 = vmul.f32 %v140_v21, %v566_v50  ;;  %v146_v8 = vmul.f32 %v140_v21, %v495_v12  ;;  %v147_v44 = vmul.f32 %v140_v21, %v502_v15 }
  0x49   :  { %v154_v50 = vmul.f32 %v140_v21, %v576_v56  ;;  %v155_v45 = vmul.f32 %v140_v21, %v586_v62  ;;  %v148_v55 = vmul.f32 %v140_v21, %v513_v20  ;;  %v149_v57 = vmul.f32 %v140_v21, %v524_v25 }
  0x4a   :  { %v164_v34 = vadd.f32 %v162_v32, %v142_v23  ;;  %v165_v35 = vadd.f32 %v162_v32, %v143_v24  ;;  %v172_v36 = vadd.f32 %v162_v32, %v150_v26  ;;  %v173_v37 = vadd.f32 %v162_v32, %v151_v27 }
  0x4b   :  { %v166_v5 = vadd.f32 %v162_v32, %v144_v28  ;;  %v167_v39 = vadd.f32 %v162_v32, %v145_v29  ;;  %v174_v6 = vadd.f32 %v162_v32, %v152_v30  ;;  %v175_v40 = vadd.f32 %v162_v32, %v153_v33 }
  0x4c   :  { %v180_v31 = vmax.f32 %v164_v34, 0.0  ;;  %v181_v41 = vmax.f32 %v165_v35, 0.0  ;;  %v188_v38 = vmax.f32 %v172_v36, 0.0  ;;  %v189_v42 = vmax.f32 %v173_v37, 0.0 }
  0x4d   :  { %v182_v46 = vmax.f32 %v166_v5, 0.0  ;;  %v183_v47 = vmax.f32 %v167_v39, 0.0  ;;  %v190_v48 = vmax.f32 %v174_v6, 0.0  ;;  %v191_v49 = vmax.f32 %v175_v40, 0.0 }
  0x4e   :  { %v196_v7 = vpack.c.bf16 %v181_v41, %v180_v31  ;;  %v200_v43 = vpack.c.bf16 %v189_v42, %v188_v38  ;;  %v168_v51 = vadd.f32 %v162_v32, %v146_v8  ;;  %v169_v12 = vadd.f32 %v162_v32, %v147_v44 }
  0x4f   :  { %v197_v52 = vpack.c.bf16 %v183_v47, %v182_v46  ;;  %v201_v15 = vpack.c.bf16 %v191_v49, %v190_v48  ;;  %v176_v53 = vadd.f32 %v162_v32, %v154_v50  ;;  %v177_v56 = vadd.f32 %v162_v32, %v155_v45 }
  0x50   :  { %405 = vmatmul.mubr.msk.bf16.vlgmr.msra.gmra.mrb[0].mxu0 %vm34_vm0, %v196_v7  ;;  %409 = vmatmul.mubr.msk.bf16.vlgmr.msra.gmra.mrb[0].mxu1 %vm34_vm0, %v200_v43  ;;  %v184_v54 = vmax.f32 %v168_v51, 0.0  ;;  %v185_v62 = vmax.f32 %v169_v12, 0.0  ;;  %v156_v60 = vmul.f32 %v140_v21, %v596_v9  ;;  %v157_v61 = vmul.f32 %v140_v21, %v606_v17 }
  0x51   :  { %294 = vmatprep.mubr.bf16.mxu0 %v426_v1  ;;  %334 = vmatprep.mubr.bf16.mxu1 %v426_v1  ;;  %v192_v58 = vmax.f32 %v176_v53, 0.0  ;;  %v193_v59 = vmax.f32 %v177_v56, 0.0  ;;  %v170_v63 = vadd.f32 %v162_v32, %v148_v55  ;;  %v171_v0 = vadd.f32 %v162_v32, %v149_v57 }
  0x52   :  { %v198_v2 = vpack.c.bf16 %v185_v62, %v184_v54  ;;  %v178_v3 = vadd.f32 %v162_v32, %v156_v60  ;;  %v179_v25 = vadd.f32 %v162_v32, %v157_v61 }
  0x53   :  { %v202_v20 = vpack.c.bf16 %v193_v59, %v192_v58  ;;  %v186_v4 = vmax.f32 %v170_v63, 0.0  ;;  %v187_v10 = vmax.f32 %v171_v0, 0.0 }
  0x54   :  { %v194_v11 = vmax.f32 %v178_v3, 0.0  ;;  %v195_v9 = vmax.f32 %v179_v25, 0.0 }
  0x55   :  { %v199_v17 = vpack.c.bf16 %v187_v10, %v186_v4 }
  0x56   :  { %v203_v13 = vpack.c.bf16 %v195_v9, %v194_v11 }
  0x58   :  { %406 = vmatmul.mubr.msk.bf16.gmra.mrb[4].mxu0 %vm34_vm0, %v197_v52  ;;  %410 = vmatmul.mubr.msk.bf16.gmra.mrb[4].mxu1 %vm34_vm0, %v201_v15 }
  0x59   :  { %304 = vmatprep.mubr.bf16.mxu0 %v426_v1  ;;  %344 = vmatprep.mubr.bf16.mxu1 %v426_v1 }
  0x60   :  { %407 = vmatmul.mubr.msk.bf16.gmra.mrb[8].mxu0 %vm34_vm0, %v198_v2  ;;  %411 = vmatmul.mubr.msk.bf16.gmra.mrb[8].mxu1 %vm34_vm0, %v202_v20 }
  0x61   :  { %314 = vmatprep.mubr.bf16.mxu0 %v426_v1  ;;  %354 = vmatprep.mubr.bf16.mxu1 %v426_v1 }
  0x68   :  { %408 = vmatmul.mubr.msk.bf16.gmra.mrb[12].mxu0 %vm34_vm0, %v199_v17  ;;  %412 = vmatmul.mubr.msk.bf16.gmra.mrb[12].mxu1 %vm34_vm0, %v203_v13 }
 0x123   :  { %v286_v14 = vpop.f32.mrb[0].mxu0  ;;  %v326_v16 = vpop.f32.mrb[0].mxu1 }
 0x124   :  { %365 = vst [vmem:[%s762_s4] sm:$0xff] %v286_v14  ;;  %381 = vst [vmem:[%s762_s4 + $0x80] sm:$0xff] %v326_v16  ;;  %v288_v18 = vpop.f32.mrb[1].mxu0  ;;  %v328_v19 = vpop.f32.mrb[1].mxu1 }
 0x125   :  { %366 = vst [vmem:[%s762_s4 + $0x8] sm:$0xff] %v288_v18  ;;  %382 = vst [vmem:[%s762_s4 + $0x88] sm:$0xff] %v328_v19  ;;  %v290_v1 = vpop.f32.mrb[2].mxu0  ;;  %v330_v21 = vpop.f32.mrb[2].mxu1 }
 0x126   :  { %367 = vst [vmem:[%s762_s4 + $0x10] sm:$0xff] %v290_v1  ;;  %383 = vst [vmem:[%s762_s4 + $0x90] sm:$0xff] %v330_v21  ;;  %v292_v22 = vpop.f32.mrb[3].mxu0  ;;  %v332_v23 = vpop.f32.mrb[3].mxu1 }
 0x127   :  { %368 = vst [vmem:[%s762_s4 + $0x18] sm:$0xff] %v292_v22  ;;  %384 = vst [vmem:[%s762_s4 + $0x98] sm:$0xff] %v332_v23 }
 0x12b   :  { %v296_v24 = vpop.f32.mrb[4].mxu0  ;;  %v336_v26 = vpop.f32.mrb[4].mxu1 }
 0x12c   :  { %369 = vst [vmem:[%s762_s4 + $0x20] sm:$0xff] %v296_v24  ;;  %385 = vst [vmem:[%s762_s4 + $0xa0] sm:$0xff] %v336_v26  ;;  %v298_v27 = vpop.f32.mrb[5].mxu0  ;;  %v338_v28 = vpop.f32.mrb[5].mxu1 }
 0x12d   :  { %370 = vst [vmem:[%s762_s4 + $0x28] sm:$0xff] %v298_v27  ;;  %386 = vst [vmem:[%s762_s4 + $0xa8] sm:$0xff] %v338_v28  ;;  %v300_v29 = vpop.f32.mrb[6].mxu0  ;;  %v340_v30 = vpop.f32.mrb[6].mxu1 }
 0x12e   :  { %371 = vst [vmem:[%s762_s4 + $0x30] sm:$0xff] %v300_v29  ;;  %387 = vst [vmem:[%s762_s4 + $0xb0] sm:$0xff] %v340_v30  ;;  %v302_v32 = vpop.f32.mrb[7].mxu0  ;;  %v342_v33 = vpop.f32.mrb[7].mxu1 }
 0x12f   :  { %372 = vst [vmem:[%s762_s4 + $0x38] sm:$0xff] %v302_v32  ;;  %388 = vst [vmem:[%s762_s4 + $0xb8] sm:$0xff] %v342_v33 }
 0x133   :  { %v306_v34 = vpop.f32.mrb[8].mxu0  ;;  %v346_v35 = vpop.f32.mrb[8].mxu1 }
 0x134   :  { %373 = vst [vmem:[%s762_s4 + $0x40] sm:$0xff] %v306_v34  ;;  %389 = vst [vmem:[%s762_s4 + $0xc0] sm:$0xff] %v346_v35  ;;  %v308_v36 = vpop.f32.mrb[9].mxu0  ;;  %v348_v37 = vpop.f32.mrb[9].mxu1 }
 0x135   :  { %374 = vst [vmem:[%s762_s4 + $0x48] sm:$0xff] %v308_v36  ;;  %390 = vst [vmem:[%s762_s4 + $0xc8] sm:$0xff] %v348_v37  ;;  %v310_v5 = vpop.f32.mrb[10].mxu0  ;;  %v350_v39 = vpop.f32.mrb[10].mxu1 }
 0x136   :  { %375 = vst [vmem:[%s762_s4 + $0x50] sm:$0xff] %v310_v5  ;;  %391 = vst [vmem:[%s762_s4 + $0xd0] sm:$0xff] %v350_v39  ;;  %v312_v6 = vpop.f32.mrb[11].mxu0  ;;  %v352_v40 = vpop.f32.mrb[11].mxu1 }
 0x137   :  { %376 = vst [vmem:[%s762_s4 + $0x58] sm:$0xff] %v312_v6  ;;  %392 = vst [vmem:[%s762_s4 + $0xd8] sm:$0xff] %v352_v40 }
 0x13b   :  { %v316_v31 = vpop.f32.mrb[12].mxu0  ;;  %v356_v41 = vpop.f32.mrb[12].mxu1 }
 0x13c   :  { %377 = vst [vmem:[%s762_s4 + $0x60] sm:$0xff] %v316_v31  ;;  %393 = vst [vmem:[%s762_s4 + $0xe0] sm:$0xff] %v356_v41  ;;  %v318_v38 = vpop.f32.mrb[13].mxu0  ;;  %v358_v42 = vpop.f32.mrb[13].mxu1 }
 0x13d   :  { %378 = vst [vmem:[%s762_s4 + $0x68] sm:$0xff] %v318_v38  ;;  %394 = vst [vmem:[%s762_s4 + $0xe8] sm:$0xff] %v358_v42  ;;  %v320_v7 = vpop.f32.mrb[14].mxu0  ;;  %v360_v43 = vpop.f32.mrb[14].mxu1 }
 0x13e   :  { %379 = vst [vmem:[%s762_s4 + $0x70] sm:$0xff] %v320_v7  ;;  %395 = vst [vmem:[%s762_s4 + $0xf0] sm:$0xff] %v360_v43  ;;  %v322_v8 = vpop.f32.mrb[15].mxu0  ;;  %v362_v44 = vpop.f32.mrb[15].mxu1 }
 0x13f   :  { %380 = vst [vmem:[%s762_s4 + $0x78] sm:$0xff] %v322_v8  ;;  %396 = vst [vmem:[%s762_s4 + $0xf8] sm:$0xff] %v362_v44 }

// kernel: conv_decoder_forward.6
= control target key start
LH: loop header
LB: loop body
LE: loop exit
PB: predicated region body
PF: predicated region fallthrough
CT: control target
= control target key end

     0   :  { %vm82_vm0 = vcmask 130048   ;;  %vm1053_vm1 = vcmask 392192   ;;  %s2435_s3 = inlined_call_operand.vmem [shape: bf16[16,48], index: 3, kind: input, shape index: {}]   ;;  %s2436_s0 = inlined_call_operand.vmem [shape: f32[512,16], index: 0, kind: input, shape index: {}]   ;;  %s2437_s1 = inlined_call_operand.vmem [shape: f32[1,16], index: 1, kind: input, shape index: {}]   ;;  %s2438_s2 = inlined_call_operand.vmem [shape: f32[1,16], index: 2, kind: input, shape index: {}]   ;;  %s2439_s4 = inlined_call_operand.vmem [shape: f32[512,48], index: 4, kind: output, shape index: {}]  }
   0x1   :  { %v1256_v0 = vld [vmem:[%s2435_s3] sm:$0xff]   ;;  %v1301_v2 = vld [vmem:[%s2436_s0 + $0x8] sm:$0xff]  ;;  %v1306_v3 = vld [vmem:[%s2436_s0 + $0x10] sm:$0xff] }
   0x2   :  { %v1296_v1 = vld [vmem:[%s2436_s0] sm:$0xff]  ;;  %1188 = vmatprep.subr.bf16.mxu0 %v1256_v0  ;;  %1254 = vmatprep.subr.bf16.mxu1 %v1256_v0  ;;  %v1311_v4 = vld [vmem:[%s2436_s0 + $0x18] sm:$0xff]  ;;  %v84_v6 = vsel %vm82_vm0, %v1301_v2, 0.0  ;;  %v86_v7 = vsel %vm82_vm0, %v1306_v3, 0.0  ;;  %v1329_v11 = vld [vmem:[%s2436_s0 + $0x28] sm:$0xff]  ;;  %v217_v57 = vmul.f32 %v1301_v2, %v1301_v2  ;;  %v218_v60 = vmul.f32 %v1306_v3, %v1306_v3 }
   0x3   :  { %v83_v5 = vsel %vm82_vm0, %v1296_v1, 0.0  ;;  %1189 = vmatpush3.bf16.msra.mxu0 %v1256_v0  ;;  %1255 = vmatpush3.bf16.msra.mxu1 %v1256_v0  ;;  %v1322_v8 = vld [vmem:[%s2436_s0 + $0x20] sm:$0xff]  ;;  %v88_v10 = vsel %vm82_vm0, %v1311_v4, 0.0  ;;  %v1336_v14 = vld [vmem:[%s2436_s0 + $0x30] sm:$0xff]  ;;  %v92_v16 = vsel %vm82_vm0, %v1329_v11, 0.0  ;;  %v1343_v17 = vld [vmem:[%s2436_s0 + $0x38] sm:$0xff]  ;;  %v216_v56 = vmul.f32 %v1296_v1, %v1296_v1 }
   0x4   :  { %v85_v9 = vadd.f32 %v84_v6, %v83_v5  ;;  %v90_v13 = vsel %vm82_vm0, %v1322_v8, 0.0  ;;  %v94_v19 = vsel %vm82_vm0, %v1336_v14, 0.0  ;;  %v1350_v20 = vld [vmem:[%s2436_s0 + $0x40] sm:$0xff]  ;;  %v96_v22 = vsel %vm82_vm0, %v1343_v17, 0.0  ;;  %v1357_v23 = vld [vmem:[%s2436_s0 + $0x48] sm:$0xff]  ;;  %v1364_v26 = vld [vmem:[%s2436_s0 + $0x50] sm:$0xff] }
   0x5   :  { %v98_v25 = vsel %vm82_vm0, %v1350_v20, 0.0  ;;  %v100_v28 = vsel %vm82_vm0, %v1357_v23, 0.0  ;;  %v1371_v29 = vld [vmem:[%s2436_s0 + $0x58] sm:$0xff]  ;;  %v102_v31 = vsel %vm82_vm0, %v1364_v26, 0.0  ;;  %v1378_v32 = vld [vmem:[%s2436_s0 + $0x60] sm:$0xff]  ;;  %v1385_v35 = vld [vmem:[%s2436_s0 + $0x68] sm:$0xff]  ;;  %v219_v62 = vmul.f32 %v1311_v4, %v1311_v4 }
   0x6   :  { %v87_v12 = vadd.f32 %v86_v7, %v85_v9  ;;  %v104_v34 = vsel %vm82_vm0, %v1371_v29, 0.0  ;;  %v106_v37 = vsel %vm82_vm0, %v1378_v32, 0.0  ;;  %v1392_v38 = vld [vmem:[%s2436_s0 + $0x70] sm:$0xff]  ;;  %v108_v40 = vsel %vm82_vm0, %v1385_v35, 0.0  ;;  %v1399_v41 = vld [vmem:[%s2436_s0 + $0x78] sm:$0xff]  ;;  %v1406_v44 = vld [vmem:[%s2436_s0 + $0x80] sm:$0xff] }
   0x7   :  { %v110_v43 = vsel %vm82_vm0, %v1392_v38, 0.0  ;;  %v112_v46 = vsel %vm82_vm0, %v1399_v41, 0.0  ;;  %v1413_v47 = vld [vmem:[%s2436_s0 + $0x88] sm:$0xff]  ;;  %v114_v49 = vsel %vm82_vm0, %v1406_v44, 0.0  ;;  %v1420_v50 = vld [vmem:[%s2436_s0 + $0x90] sm:$0xff]  ;;  %v1427_v53 = vld [vmem:[%s2436_s0 + $0x98] sm:$0xff]  ;;  %v220_v6 = vmul.f32 %v1322_v8, %v1322_v8 }
   0x8   :  { %v89_v15 = vadd.f32 %v88_v10, %v87_v12  ;;  %2459 = vst [vmem:[#allocation2_spill] sm:$0xff] %v1420_v50  ;;  %v116_v52 = vsel %vm82_vm0, %v1413_v47, 0.0  ;;  %2460 = vst [vmem:[#allocation3_spill] sm:$0xff] %v1427_v53  ;;  %v118_v55 = vsel %vm82_vm0, %v1420_v50, 0.0  ;;  %v1438_v58 = vld [vmem:[%s2436_s0 + $0xa0] sm:$0xff]  ;;  %v120_v61 = vsel %vm82_vm0, %v1427_v53, 0.0 }
   0x9   :  { %2461 = vst [vmem:[#allocation4_spill] sm:$0xff] %v1438_v58  ;;  %v1449_v63 = vld [vmem:[%s2436_s0 + $0xa8] sm:$0xff]  ;;  %v122_v5 = vsel %vm82_vm0, %v1438_v58, 0.0  ;;  %v280_v7 = vsel %vm82_vm0, %v216_v56, 0.0  ;;  %v281_v9 = vsel %vm82_vm0, %v217_v57, 0.0  ;;  %v1460_v10 = vld [vmem:[%s2436_s0 + $0xb0] sm:$0xff] }
   0xa   :  { %v91_v18 = vadd.f32 %v90_v13, %v89_v15  ;;  %2462 = vst [vmem:[#allocation5_spill] sm:$0xff] %v1449_v63  ;;  %2463 = vst [vmem:[#allocation6_spill] sm:$0xff] %v1460_v10  ;;  %v282_v13 = vadd.f32 %v281_v9, %v280_v7  ;;  %v283_v15 = vsel %vm82_vm0, %v218_v60, 0.0  ;;  %v1511_v56 = vld [vmem:[%s2436_s0 + $0xd8] sm:$0xff]  ;;  %v227_v9 = vmul.f32 %v1371_v29, %v1371_v29 }
   0xb   :  { %v136_v7 = vsel %vm82_vm0, %v1511_v56, 0.0 }
   0xc   :  { %v93_v21 = vadd.f32 %v92_v16, %v91_v18  ;;  %v124_v16 = vsel %vm82_vm0, %v1449_v63, 0.0  ;;  %v221_v18 = vmul.f32 %v1329_v11, %v1329_v11 }
   0xe   :  { %v95_v24 = vadd.f32 %v94_v19, %v93_v21  ;;  %v285_v19 = vsel %vm82_vm0, %v219_v62, 0.0  ;;  %v1471_v21 = vld [vmem:[%s2436_s0 + $0xb8] sm:$0xff] }
   0xf   :  { %2464 = vst [vmem:[#allocation7_spill] sm:$0xff] %v1471_v21 }
  0x10   :  { %v97_v27 = vadd.f32 %v96_v22, %v95_v24  ;;  %v284_v24 = vadd.f32 %v283_v15, %v282_v13  ;;  %v1531_v13 = vld [vmem:[%s2436_s0 + $0xe8] sm:$0xff] }
  0x12   :  { %v99_v30 = vadd.f32 %v98_v25, %v97_v27  ;;  %v126_v25 = vsel %vm82_vm0, %v1460_v10, 0.0  ;;  %v222_v27 = vmul.f32 %v1336_v14, %v1336_v14 }
  0x14   :  { %v101_v33 = vadd.f32 %v100_v28, %v99_v30  ;;  %v287_v28 = vsel %vm82_vm0, %v220_v6, 0.0  ;;  %v1481_v30 = vld [vmem:[%s2436_s0 + $0xc0] sm:$0xff] }
  0x15   :  { %2465 = vst [vmem:[#allocation8_spill] sm:$0xff] %v1481_v30 }
  0x16   :  { %v103_v36 = vadd.f32 %v102_v31, %v101_v33  ;;  %v286_v33 = vadd.f32 %v285_v19, %v284_v24  ;;  %v228_v19 = vmul.f32 %v1378_v32, %v1378_v32  ;;  %v1541_v24 = vld [vmem:[%s2436_s0 + $0xf0] sm:$0xff] }
  0x18   :  { %v105_v39 = vadd.f32 %v104_v34, %v103_v36  ;;  %v128_v34 = vsel %vm82_vm0, %v1471_v21, 0.0  ;;  %v223_v36 = vmul.f32 %v1343_v17, %v1343_v17 }
  0x1a   :  { %v107_v42 = vadd.f32 %v106_v37, %v105_v39  ;;  %v289_v37 = vsel %vm82_vm0, %v221_v18, 0.0  ;;  %v1491_v39 = vld [vmem:[%s2436_s0 + $0xc8] sm:$0xff] }
  0x1b   :  { %2466 = vst [vmem:[#allocation9_spill] sm:$0xff] %v1491_v39 }
  0x1c   :  { %v109_v45 = vadd.f32 %v108_v40, %v107_v42  ;;  %v288_v42 = vadd.f32 %v287_v28, %v286_v33  ;;  %v140_v28 = vsel %vm82_vm0, %v1531_v13, 0.0  ;;  %v301_v33 = vsel %vm82_vm0, %v227_v9, 0.0 }
  0x1e   :  { %v111_v48 = vadd.f32 %v110_v43, %v109_v45  ;;  %v130_v43 = vsel %vm82_vm0, %v1481_v30, 0.0  ;;  %v224_v45 = vmul.f32 %v1350_v20, %v1350_v20 }
  0x20   :  { %v113_v51 = vadd.f32 %v112_v46, %v111_v48  ;;  %v291_v46 = vsel %vm82_vm0, %v222_v27, 0.0  ;;  %v1501_v48 = vld [vmem:[%s2436_s0 + $0xd0] sm:$0xff]  ;;  %v295_v62 = vsel %vm82_vm0, %v224_v45, 0.0  ;;  %v1561_v45 = vld [vmem:[%s2436_s0 + $0x100] sm:$0xff] }
  0x21   :  { %v134_v60 = vsel %vm82_vm0, %v1501_v48, 0.0 }
  0x22   :  { %v115_v54 = vadd.f32 %v114_v49, %v113_v51  ;;  %v290_v51 = vadd.f32 %v289_v37, %v288_v42  ;;  %v230_v42 = vmul.f32 %v1392_v38, %v1392_v38 }
  0x24   :  { %v117_v59 = vadd.f32 %v116_v52, %v115_v54  ;;  %v132_v52 = vsel %vm82_vm0, %v1491_v39, 0.0  ;;  %v225_v54 = vmul.f32 %v1357_v23, %v1357_v23 }
  0x26   :  { %v119_v0 = vadd.f32 %v118_v55, %v117_v59  ;;  %v293_v55 = vsel %vm82_vm0, %v223_v36, 0.0  ;;  %v292_v59 = vadd.f32 %v291_v46, %v290_v51 }
  0x28   :  { %v121_v12 = vadd.f32 %v120_v61, %v119_v0  ;;  %v226_v61 = vmul.f32 %v1364_v26, %v1364_v26  ;;  %v1521_v0 = vld [vmem:[%s2436_s0 + $0xe0] sm:$0xff]  ;;  %v294_v6 = vadd.f32 %v293_v55, %v292_v59  ;;  %v1571_v55 = vld [vmem:[%s2436_s0 + $0x108] sm:$0xff] }
  0x29   :  { %v138_v18 = vsel %vm82_vm0, %v1521_v0, 0.0  ;;  %v148_v9 = vsel %vm82_vm0, %v1571_v55, 0.0 }
  0x2a   :  { %v123_v22 = vadd.f32 %v122_v5, %v121_v12  ;;  %v297_v12 = vsel %vm82_vm0, %v225_v54, 0.0 }
  0x2c   :  { %v125_v31 = vadd.f32 %v124_v16, %v123_v22  ;;  %v296_v16 = vadd.f32 %v295_v62, %v294_v6  ;;  %v299_v22 = vsel %vm82_vm0, %v226_v61, 0.0  ;;  %v232_v61 = vmul.f32 %v1406_v44, %v1406_v44 }
  0x2d   :  { %v307_v62 = vsel %vm82_vm0, %v230_v42, 0.0  ;;  %v1611_v42 = vld [vmem:[%s2436_s0 + $0x128] sm:$0xff] }
  0x2e   :  { %v127_v40 = vadd.f32 %v126_v25, %v125_v31  ;;  %v298_v27 = vadd.f32 %v297_v12, %v296_v16  ;;  %v229_v31 = vmul.f32 %v1385_v35, %v1385_v35  ;;  %v233_v12 = vmul.f32 %v1413_v47, %v1413_v47  ;;  %v1591_v16 = vld [vmem:[%s2436_s0 + $0x118] sm:$0xff] }
  0x30   :  { %v129_v49 = vadd.f32 %v128_v34, %v127_v40  ;;  %v1551_v34 = vld [vmem:[%s2436_s0 + $0xf8] sm:$0xff]  ;;  %v300_v37 = vadd.f32 %v299_v22, %v298_v27  ;;  %v142_v40 = vsel %vm82_vm0, %v1541_v24, 0.0  ;;  %v305_v54 = vsel %vm82_vm0, %v229_v31, 0.0 }
  0x31   :  { %v144_v51 = vsel %vm82_vm0, %v1551_v34, 0.0  ;;  %v311_v27 = vsel %vm82_vm0, %v232_v61, 0.0  ;;  %v237_v61 = vmul.f32 %v1449_v63, %v1449_v63  ;;  %v1845_v63 = vld [vmem:[%s2436_s0 + $0x1d8] sm:$0xff] }
  0x32   :  { %v131_v57 = vadd.f32 %v130_v43, %v129_v49  ;;  %v303_v43 = vsel %vm82_vm0, %v228_v19, 0.0  ;;  %v302_v49 = vadd.f32 %v301_v33, %v300_v37  ;;  %v235_v37 = vmul.f32 %v1427_v53, %v1427_v53  ;;  %2473 = vst [vmem:[#allocation16_spill] sm:$0xff] %v1845_v63  ;;  %v1871_v53 = vld [vmem:[%s2436_s0 + $0x1e8] sm:$0xff] }
  0x33   :  { %2475 = vst [vmem:[#allocation18_spill] sm:$0xff] %v1871_v53 }
  0x34   :  { %v133_v5 = vadd.f32 %v132_v52, %v131_v57  ;;  %v231_v52 = vmul.f32 %v1399_v41, %v1399_v41  ;;  %v304_v59 = vadd.f32 %v303_v43, %v302_v49 }
  0x36   :  { %v135_v15 = vadd.f32 %v134_v60, %v133_v5  ;;  %v146_v60 = vsel %vm82_vm0, %v1561_v45, 0.0  ;;  %v1581_v5 = vld [vmem:[%s2436_s0 + $0x110] sm:$0xff] }
  0x37   :  { %v150_v22 = vsel %vm82_vm0, %v1581_v5, 0.0 }
  0x38   :  { %v137_v25 = vadd.f32 %v136_v7, %v135_v15  ;;  %v306_v7 = vadd.f32 %v305_v54, %v304_v59  ;;  %v309_v15 = vsel %vm82_vm0, %v231_v52, 0.0  ;;  %v1621_v54 = vld [vmem:[%s2436_s0 + $0x130] sm:$0xff] }
  0x3a   :  { %v139_v36 = vadd.f32 %v138_v18, %v137_v25  ;;  %v308_v19 = vadd.f32 %v307_v62, %v306_v7  ;;  %v234_v25 = vmul.f32 %v1420_v50, %v1420_v50  ;;  %v317_v62 = vsel %vm82_vm0, %v235_v37, 0.0  ;;  %v1884_v50 = vld [vmem:[%s2436_s0 + $0x1f0] sm:$0xff] }
  0x3b   :  { %2476 = vst [vmem:[#allocation19_spill] sm:$0xff] %v1884_v50 }
  0x3c   :  { %v141_v46 = vadd.f32 %v140_v28, %v139_v36  ;;  %v1601_v28 = vld [vmem:[%s2436_s0 + $0x120] sm:$0xff]  ;;  %v310_v33 = vadd.f32 %v309_v15, %v308_v19  ;;  %v152_v36 = vsel %vm82_vm0, %v1591_v16, 0.0  ;;  %v315_v52 = vsel %vm82_vm0, %v234_v25, 0.0 }
  0x3d   :  { %v154_v49 = vsel %vm82_vm0, %v1601_v28, 0.0  ;;  %v238_v15 = vmul.f32 %v1460_v10, %v1460_v10  ;;  %v1641_v19 = vld [vmem:[%s2436_s0 + $0x140] sm:$0xff] }
  0x3e   :  { %v143_v57 = vadd.f32 %v142_v40, %v141_v46  ;;  %v313_v40 = vsel %vm82_vm0, %v233_v12, 0.0  ;;  %v312_v46 = vadd.f32 %v311_v27, %v310_v33  ;;  %v158_v12 = vsel %vm82_vm0, %v1621_v54, 0.0 }
  0x3f   :  { %v321_v33 = vsel %vm82_vm0, %v237_v61, 0.0 }
  0x40   :  { %v145_v6 = vadd.f32 %v144_v51, %v143_v57  ;;  %v236_v51 = vmul.f32 %v1438_v58, %v1438_v58  ;;  %v314_v59 = vadd.f32 %v313_v40, %v312_v46  ;;  %v240_v46 = vmul.f32 %v1481_v30, %v1481_v30  ;;  %v1858_v58 = vld [vmem:[%s2436_s0 + $0x1e0] sm:$0xff] }
  0x41   :  { %2474 = vst [vmem:[#allocation17_spill] sm:$0xff] %v1858_v58 }
  0x42   :  { %v147_v18 = vadd.f32 %v146_v60, %v145_v6  ;;  %v156_v60 = vsel %vm82_vm0, %v1611_v42, 0.0  ;;  %v1631_v6 = vld [vmem:[%s2436_s0 + $0x138] sm:$0xff] }
  0x43   :  { %v160_v27 = vsel %vm82_vm0, %v1631_v6, 0.0 }
  0x44   :  { %v149_v31 = vadd.f32 %v148_v9, %v147_v18  ;;  %v316_v9 = vadd.f32 %v315_v52, %v314_v59  ;;  %v319_v18 = vsel %vm82_vm0, %v236_v51, 0.0  ;;  %v1661_v51 = vld [vmem:[%s2436_s0 + $0x150] sm:$0xff] }
  0x46   :  { %v151_v43 = vadd.f32 %v150_v22, %v149_v31  ;;  %v318_v25 = vadd.f32 %v317_v62, %v316_v9  ;;  %v239_v31 = vmul.f32 %v1471_v21, %v1471_v21  ;;  %v1671_v62 = vld [vmem:[%s2436_s0 + $0x158] sm:$0xff]  ;;  %v255_v21 = vmul.f32 %v1631_v6, %v1631_v6 }
  0x48   :  { %v153_v57 = vadd.f32 %v152_v36, %v151_v43  ;;  %v1651_v36 = vld [vmem:[%s2436_s0 + $0x148] sm:$0xff]  ;;  %v320_v40 = vadd.f32 %v319_v18, %v318_v25  ;;  %v162_v43 = vsel %vm82_vm0, %v1641_v19, 0.0  ;;  %v325_v61 = vsel %vm82_vm0, %v239_v31, 0.0 }
  0x49   :  { %v164_v59 = vsel %vm82_vm0, %v1651_v36, 0.0  ;;  %v327_v18 = vsel %vm82_vm0, %v240_v46, 0.0  ;;  %v168_v31 = vsel %vm82_vm0, %v1671_v62, 0.0 }
  0x4a   :  { %v155_v7 = vadd.f32 %v154_v49, %v153_v57  ;;  %v323_v49 = vsel %vm82_vm0, %v238_v15, 0.0  ;;  %v322_v57 = vadd.f32 %v321_v33, %v320_v40  ;;  %v242_v15 = vmul.f32 %v1501_v48, %v1501_v48  ;;  %v1691_v48 = vld [vmem:[%s2436_s0 + $0x168] sm:$0xff] }
  0x4b   :  { %v243_v33 = vmul.f32 %v1511_v56, %v1511_v56  ;;  %v1701_v56 = vld [vmem:[%s2436_s0 + $0x170] sm:$0xff] }
  0x4c   :  { %v157_v22 = vadd.f32 %v156_v60, %v155_v7  ;;  %v241_v60 = vmul.f32 %v1491_v39, %v1491_v39  ;;  %v324_v9 = vadd.f32 %v323_v49, %v322_v57  ;;  %v244_v49 = vmul.f32 %v1521_v0, %v1521_v0  ;;  %v1711_v0 = vld [vmem:[%s2436_s0 + $0x178] sm:$0xff] }
  0x4e   :  { %v159_v37 = vadd.f32 %v158_v12, %v157_v22  ;;  %v166_v12 = vsel %vm82_vm0, %v1661_v51, 0.0  ;;  %v1681_v22 = vld [vmem:[%s2436_s0 + $0x160] sm:$0xff] }
  0x4f   :  { %v170_v46 = vsel %vm82_vm0, %v1681_v22, 0.0 }
  0x50   :  { %v161_v52 = vadd.f32 %v160_v27, %v159_v37  ;;  %v326_v27 = vadd.f32 %v325_v61, %v324_v9  ;;  %v329_v37 = vsel %vm82_vm0, %v241_v60, 0.0  ;;  %v172_v60 = vsel %vm82_vm0, %v1691_v48, 0.0 }
  0x51   :  { %v245_v61 = vmul.f32 %v1531_v13, %v1531_v13  ;;  %v1721_v13 = vld [vmem:[%s2436_s0 + $0x180] sm:$0xff] }
  0x52   :  { %v163_v7 = vadd.f32 %v162_v43, %v161_v52  ;;  %v328_v43 = vadd.f32 %v327_v18, %v326_v27  ;;  %v331_v52 = vsel %vm82_vm0, %v242_v15, 0.0  ;;  %v174_v15 = vsel %vm82_vm0, %v1701_v56, 0.0 }
  0x53   :  { %v246_v18 = vmul.f32 %v1541_v24, %v1541_v24  ;;  %v1731_v24 = vld [vmem:[%s2436_s0 + $0x188] sm:$0xff] }
  0x54   :  { %v165_v25 = vadd.f32 %v164_v59, %v163_v7  ;;  %v330_v59 = vadd.f32 %v329_v37, %v328_v43  ;;  %v333_v7 = vsel %vm82_vm0, %v243_v33, 0.0  ;;  %v176_v33 = vsel %vm82_vm0, %v1711_v0, 0.0 }
  0x55   :  { %v247_v37 = vmul.f32 %v1551_v34, %v1551_v34  ;;  %v1741_v34 = vld [vmem:[%s2436_s0 + $0x190] sm:$0xff] }
  0x56   :  { %v167_v40 = vadd.f32 %v166_v12, %v165_v25  ;;  %v332_v12 = vadd.f32 %v331_v52, %v330_v59  ;;  %v335_v25 = vsel %vm82_vm0, %v244_v49, 0.0  ;;  %v178_v49 = vsel %vm82_vm0, %v1721_v13, 0.0 }
  0x57   :  { %v248_v52 = vmul.f32 %v1561_v45, %v1561_v45 }
  0x58   :  { %v169_v57 = vadd.f32 %v168_v31, %v167_v40  ;;  %v334_v31 = vadd.f32 %v333_v7, %v332_v12  ;;  %v337_v40 = vsel %vm82_vm0, %v245_v61, 0.0  ;;  %v180_v61 = vsel %vm82_vm0, %v1731_v24, 0.0  ;;  %v1751_v12 = vld [vmem:[%s2436_s0 + $0x198] sm:$0xff] }
  0x59   :  { %v249_v7 = vmul.f32 %v1571_v55, %v1571_v55  ;;  %2467 = vst [vmem:[#allocation10_spill] sm:$0xff] %v1751_v12 }
  0x5a   :  { %v171_v9 = vadd.f32 %v170_v46, %v169_v57  ;;  %v336_v46 = vadd.f32 %v335_v25, %v334_v31  ;;  %v339_v57 = vsel %vm82_vm0, %v246_v18, 0.0  ;;  %v182_v25 = vsel %vm82_vm0, %v1741_v34, 0.0 }
  0x5b   :  { %v343_v31 = vsel %vm82_vm0, %v248_v52, 0.0 }
  0x5c   :  { %v173_v27 = vadd.f32 %v172_v60, %v171_v9  ;;  %v338_v60 = vadd.f32 %v337_v40, %v336_v46  ;;  %v341_v9 = vsel %vm82_vm0, %v247_v37, 0.0  ;;  %v251_v46 = vmul.f32 %v1591_v16, %v1591_v16 }
  0x5e   :  { %v175_v43 = vadd.f32 %v174_v15, %v173_v27  ;;  %v340_v18 = vadd.f32 %v339_v57, %v338_v60  ;;  %v250_v27 = vmul.f32 %v1581_v5, %v1581_v5  ;;  %v1771_v57 = vld [vmem:[%s2436_s0 + $0x1a8] sm:$0xff] }
  0x5f   :  { %2469 = vst [vmem:[#allocation12_spill] sm:$0xff] %v1771_v57  ;;  %v188_v39 = vsel %vm82_vm0, %v1771_v57, 0.0 }
  0x60   :  { %v177_v59 = vadd.f32 %v176_v33, %v175_v43  ;;  %v1761_v33 = vld [vmem:[%s2436_s0 + $0x1a0] sm:$0xff]  ;;  %v342_v40 = vadd.f32 %v341_v9, %v340_v18  ;;  %v184_v43 = vsel %vm82_vm0, %v1751_v12, 0.0  ;;  %v347_v9 = vsel %vm82_vm0, %v250_v27, 0.0 }
  0x61   :  { %2468 = vst [vmem:[#allocation11_spill] sm:$0xff] %v1761_v33  ;;  %v186_v60 = vsel %vm82_vm0, %v1761_v33, 0.0 }
  0x62   :  { %v179_v15 = vadd.f32 %v178_v49, %v177_v59  ;;  %v345_v49 = vsel %vm82_vm0, %v249_v7, 0.0  ;;  %v344_v59 = vadd.f32 %v343_v31, %v342_v40  ;;  %v349_v31 = vsel %vm82_vm0, %v251_v46, 0.0 }
  0x64   :  { %v181_v37 = vadd.f32 %v180_v61, %v179_v15  ;;  %v252_v61 = vmul.f32 %v1601_v28, %v1601_v28  ;;  %v1781_v15 = vld [vmem:[%s2436_s0 + $0x1b0] sm:$0xff]  ;;  %v346_v18 = vadd.f32 %v345_v49, %v344_v59 }
  0x65   :  { %2470 = vst [vmem:[#allocation13_spill] sm:$0xff] %v1781_v15  ;;  %v190_v30 = vsel %vm82_vm0, %v1781_v15, 0.0 }
  0x66   :  { %v183_v52 = vadd.f32 %v182_v25, %v181_v37  ;;  %v253_v25 = vmul.f32 %v1611_v42, %v1611_v42  ;;  %v1791_v37 = vld [vmem:[%s2436_s0 + $0x1b8] sm:$0xff]  ;;  %v348_v40 = vadd.f32 %v347_v9, %v346_v18  ;;  %v351_v49 = vsel %vm82_vm0, %v252_v61, 0.0 }
  0x67   :  { %v192_v46 = vsel %vm82_vm0, %v1791_v37, 0.0  ;;  %v256_v61 = vmul.f32 %v1641_v19, %v1641_v19 }
  0x68   :  { %v185_v7 = vadd.f32 %v184_v43, %v183_v52  ;;  %v254_v43 = vmul.f32 %v1621_v54, %v1621_v54  ;;  %v350_v59 = vadd.f32 %v349_v31, %v348_v40  ;;  %v353_v10 = vsel %vm82_vm0, %v253_v25, 0.0 }
  0x69   :  { %v257_v25 = vmul.f32 %v1651_v36, %v1651_v36  ;;  %v357_v40 = vsel %vm82_vm0, %v255_v21, 0.0 }
  0x6a   :  { %v187_v27 = vadd.f32 %v186_v60, %v185_v7  ;;  %v1806_v60 = vld [vmem:[%s2436_s0 + $0x1c0] sm:$0xff]  ;;  %v352_v7 = vadd.f32 %v351_v49, %v350_v59 }
  0x6b   :  { %v361_v21 = vsel %vm82_vm0, %v257_v25, 0.0 }
  0x6c   :  { %v189_v52 = vadd.f32 %v188_v39, %v187_v27  ;;  %v355_v39 = vsel %vm82_vm0, %v254_v43, 0.0  ;;  %v354_v31 = vadd.f32 %v353_v10, %v352_v7  ;;  %v194_v27 = vsel %vm82_vm0, %v1806_v60, 0.0  ;;  %v1832_v7 = vld [vmem:[%s2436_s0 + $0x1d0] sm:$0xff] }
  0x6d   :  { %v359_v43 = vsel %vm82_vm0, %v256_v61, 0.0  ;;  %2472 = vst [vmem:[#allocation15_spill] sm:$0xff] %v1832_v7 }
  0x6e   :  { %v191_v9 = vadd.f32 %v190_v30, %v189_v52  ;;  %v1819_v30 = vld [vmem:[%s2436_s0 + $0x1c8] sm:$0xff]  ;;  %v356_v49 = vadd.f32 %v355_v39, %v354_v31  ;;  %v258_v52 = vmul.f32 %v1661_v51, %v1661_v51  ;;  %v260_v31 = vmul.f32 %v1681_v22, %v1681_v22 }
  0x6f   :  { %2471 = vst [vmem:[#allocation14_spill] sm:$0xff] %v1819_v30 }
  0x70   :  { %v193_v18 = vadd.f32 %v192_v46, %v191_v9  ;;  %v358_v59 = vadd.f32 %v357_v40, %v356_v49  ;;  %v196_v46 = vsel %vm82_vm0, %v1819_v30, 0.0  ;;  %v259_v9 = vmul.f32 %v1671_v62, %v1671_v62 }
  0x71   :  { %v363_v61 = vsel %vm82_vm0, %v258_v52, 0.0  ;;  %v198_v40 = vsel %vm82_vm0, %v1832_v7, 0.0  ;;  %v261_v49 = vmul.f32 %v1691_v48, %v1691_v48  ;;  %v367_v52 = vsel %vm82_vm0, %v260_v31, 0.0 }
  0x72   :  { %v195_v10 = vadd.f32 %v194_v27, %v193_v18  ;;  %v360_v39 = vadd.f32 %v359_v43, %v358_v59  ;;  %v365_v25 = vsel %vm82_vm0, %v259_v9, 0.0  ;;  %v262_v59 = vmul.f32 %v1701_v56, %v1701_v56 }
  0x73   :  { %v369_v9 = vsel %vm82_vm0, %v261_v49, 0.0 }
  0x74   :  { %v197_v18 = vadd.f32 %v196_v46, %v195_v10  ;;  %v362_v27 = vadd.f32 %v361_v21, %v360_v39  ;;  %v200_v21 = vsel %vm82_vm0, %v1845_v63, 0.0  ;;  %v263_v39 = vmul.f32 %v1711_v0, %v1711_v0 }
  0x75   :  { %v371_v31 = vsel %vm82_vm0, %v262_v59, 0.0 }
  0x76   :  { %v364_v43 = vadd.f32 %v363_v61, %v362_v27  ;;  %v199_v10 = vadd.f32 %v198_v40, %v197_v18  ;;  %v264_v27 = vmul.f32 %v1721_v13, %v1721_v13  ;;  %v373_v49 = vsel %vm82_vm0, %v263_v39, 0.0 }
  0x78   :  { %v366_v46 = vadd.f32 %v365_v25, %v364_v43  ;;  %v201_v18 = vadd.f32 %v200_v21, %v199_v10  ;;  %v202_v25 = vsel %vm82_vm0, %v1858_v58, 0.0  ;;  %v265_v43 = vmul.f32 %v1731_v24, %v1731_v24 }
  0x79   :  { %v375_v59 = vsel %vm82_vm0, %v264_v27, 0.0 }
  0x7a   :  { %v368_v61 = vadd.f32 %v367_v52, %v366_v46  ;;  %v266_v46 = vmul.f32 %v1741_v34, %v1741_v34  ;;  %v203_v10 = vadd.f32 %v202_v25, %v201_v18  ;;  %v377_v39 = vsel %vm82_vm0, %v265_v43, 0.0 }
  0x7c   :  { %v370_v40 = vadd.f32 %v369_v9, %v368_v61  ;;  %v204_v9 = vsel %vm82_vm0, %v1871_v53, 0.0  ;;  %v267_v61 = vmul.f32 %v1751_v12, %v1751_v12  ;;  %v379_v27 = vsel %vm82_vm0, %v266_v46, 0.0  ;;  %v1897_v12 = vld [vmem:[%s2436_s0 + $0x1f8] sm:$0xff] }
  0x7d   :  { %v205_v18 = vadd.f32 %v204_v9, %v203_v10  ;;  %2477 = vst [vmem:[#allocation20_spill] sm:$0xff] %v1897_v12 }
  0x7e   :  { %v372_v52 = vadd.f32 %v371_v31, %v370_v40  ;;  %v268_v40 = vmul.f32 %v1761_v33, %v1761_v33  ;;  %v381_v43 = vsel %vm82_vm0, %v267_v61, 0.0  ;;  %v272_v33 = vmul.f32 %v1806_v60, %v1806_v60 }
  0x80   :  { %v374_v21 = vadd.f32 %v373_v49, %v372_v52  ;;  %v206_v49 = vsel %vm82_vm0, %v1884_v50, 0.0  ;;  %v269_v52 = vmul.f32 %v1771_v57, %v1771_v57  ;;  %v383_v46 = vsel %vm82_vm0, %v268_v40, 0.0 }
  0x81   :  { %v207_v10 = vadd.f32 %v206_v49, %v205_v18  ;;  %v273_v40 = vmul.f32 %v1819_v30, %v1819_v30 }
  0x82   :  { %v376_v31 = vadd.f32 %v375_v59, %v374_v21  ;;  %v270_v21 = vmul.f32 %v1781_v15, %v1781_v15  ;;  %v385_v61 = vsel %vm82_vm0, %v269_v52, 0.0 }
  0x84   :  { %v378_v25 = vadd.f32 %v377_v39, %v376_v31  ;;  %v208_v39 = vsel %vm82_vm0, %v1897_v12, 0.0  ;;  %v271_v31 = vmul.f32 %v1791_v37, %v1791_v37 }
  0x86   :  { %v380_v59 = vadd.f32 %v379_v27, %v378_v25  ;;  %v387_v27 = vsel %vm82_vm0, %v270_v21, 0.0  ;;  %v209_v25 = vadd.f32 %v208_v39, %v207_v10  ;;  %v389_v18 = vsel %vm82_vm0, %v271_v31, 0.0 }
  0x87   :  { %v393_v21 = vsel %vm82_vm0, %v273_v40, 0.0 }
  0x88   :  { %v382_v9 = vadd.f32 %v381_v43, %v380_v59  ;;  %v274_v43 = vmul.f32 %v1832_v7, %v1832_v7  ;;  %v391_v59 = vsel %vm82_vm0, %v272_v33, 0.0  ;;  %v210_v52 = vrot.slane %v209_v25, 4 }
  0x8a   :  { %v384_v57 = vadd.f32 %v383_v46, %v382_v9  ;;  %v275_v9 = vmul.f32 %v1845_v63, %v1845_v63  ;;  %v395_v39 = vsel %vm82_vm0, %v274_v43, 0.0  ;;  %v211_v31 = vadd.f32 %v210_v52, %v209_v25 }
  0x8c   :  { %v386_v15 = vadd.f32 %v385_v61, %v384_v57  ;;  %v276_v57 = vmul.f32 %v1858_v58, %v1858_v58  ;;  %v277_v61 = vmul.f32 %v1871_v53, %v1871_v53  ;;  %v397_v33 = vsel %vm82_vm0, %v275_v9, 0.0 }
  0x8d   :  { %v212_v40 = vrot.slane %v211_v31, 2 }
  0x8e   :  { %v388_v49 = vadd.f32 %v387_v27, %v386_v15  ;;  %v401_v43 = vsel %vm82_vm0, %v277_v61, 0.0 }
  0x90   :  { %v390_v46 = vadd.f32 %v389_v18, %v388_v49  ;;  %v278_v18 = vmul.f32 %v1884_v50, %v1884_v50  ;;  %v399_v49 = vsel %vm82_vm0, %v276_v57, 0.0 }
  0x92   :  { %v392_v10 = vadd.f32 %v391_v59, %v390_v46  ;;  %v279_v46 = vmul.f32 %v1897_v12, %v1897_v12  ;;  %v403_v52 = vsel %vm82_vm0, %v278_v18, 0.0 }
  0x94   :  { %v394_v15 = vadd.f32 %v393_v21, %v392_v10  ;;  %v213_v21 = vadd.f32 %v212_v40, %v211_v31  ;;  %v405_v9 = vsel %vm82_vm0, %v279_v46, 0.0  ;;  %v425_v31 = vlaneseq  ;;  %v417_v40 = vld [vmem:[%s2437_s1] sm:$0x1] }
  0x96   :  { %v396_v27 = vadd.f32 %v395_v39, %v394_v15  ;;  %v214_v15 = vrot.slane %v213_v21, 1  ;;  %v426_v18 = vshrl.u32 %v425_v31, 7 }
  0x98   :  { %v398_v59 = vadd.f32 %v397_v33, %v396_v27  ;;  %v215_v58 = vadd.f32 %v214_v15, %v213_v21  ;;  %v427_v46 = vsub.s32 0, %v426_v18 }
  0x9a   :  { %v400_v25 = vadd.f32 %v399_v49, %v398_v59  ;;  %v413_v27 = vmul.f32 0.001953125, %v215_v58 }
  0x9c   :  { %v402_v10 = vadd.f32 %v401_v43, %v400_v25  ;;  %v415_v30 = vmul.f32 %v413_v27, %v413_v27 }
  0x9e   :  { %v404_v39 = vadd.f32 %v403_v52, %v402_v10 }
  0xa0   :  { %v406_v53 = vadd.f32 %v405_v9, %v404_v39 }
  0xa2   :  { %v407_v50 = vrot.slane %v406_v53, 4 }
  0xa4   :  { %v408_v57 = vadd.f32 %v407_v50, %v406_v53  ;;  %v421_v50 = vld [vmem:[%s2438_s2] sm:$0x1] }
  0xa6   :  { %v409_v63 = vrot.slane %v408_v57, 2 }
  0xa8   :  { %v410_v33 = vadd.f32 %v409_v63, %v408_v57 }
  0xaa   :  { %v411_v7 = vrot.slane %v410_v33, 1 }
  0xac   :  { %v412_v12 = vadd.f32 %v411_v7, %v410_v33 }
  0xae   :  { %v414_v61 = vmul.f32 0.001953125, %v412_v12 }
  0xb0   :  { %v416_v49 = vsub.f32 %v414_v61, %v415_v30 }
  0xb2   :  { %v418_v59 = vadd.f32 1e-05, %v416_v49 }
  0xb4   :  { %1257 = vrsqrt.f32 %v418_v59 }
  0xbe   :  { %v1258_v43 = vpop.eup %1257 }
  0xbf   :  { %v420_v25 = vmul.f32 %v1258_v43, %v417_v40 }
  0xc1   :  { %v422_v53 = vmul.f32 %v420_v25, %v413_v27  ;;  %v1939_v58 = vrot.slane %v420_v25, %v427_v46 }
  0xc3   :  { %v423_v63 = vsub.f32 %v421_v50, %v422_v53  ;;  %v430_v12 = vmul.f32 %v1939_v58, %v1296_v1  ;;  %v431_v30 = vmul.f32 %v1939_v58, %v1301_v2  ;;  %v462_v7 = vmul.f32 %v1939_v58, %v1561_v45 }
  0xc4   :  { %v463_v52 = vmul.f32 %v1939_v58, %v1571_v55  ;;  %v432_v21 = vmul.f32 %v1939_v58, %v1306_v3  ;;  %v433_v10 = vmul.f32 %v1939_v58, %v1311_v4  ;;  %v464_v9 = vmul.f32 %v1939_v58, %v1581_v5 }
  0xc5   :  { %v1955_v39 = vrot.slane %v423_v63, %v427_v46  ;;  %v465_v1 = vmul.f32 %v1939_v58, %v1591_v16  ;;  %v434_v2 = vmul.f32 %v1939_v58, %v1322_v8  ;;  %v435_v45 = vmul.f32 %v1939_v58, %v1329_v11 }
  0xc6   :  { %v466_v3 = vmul.f32 %v1939_v58, %v1601_v28  ;;  %v467_v4 = vmul.f32 %v1939_v58, %v1611_v42  ;;  %v436_v55 = vmul.f32 %v1939_v58, %v1336_v14  ;;  %v437_v5 = vmul.f32 %v1939_v58, %v1343_v17 }
  0xc7   :  { %v500_v16 = vadd.f32 %v1955_v39, %v430_v12  ;;  %v501_v15 = vadd.f32 %v1955_v39, %v431_v30  ;;  %v532_v8 = vadd.f32 %v1955_v39, %v462_v7  ;;  %v533_v11 = vadd.f32 %v1955_v39, %v463_v52 }
  0xc8   :  { %v502_v57 = vadd.f32 %v1955_v39, %v432_v21  ;;  %v503_v28 = vadd.f32 %v1955_v39, %v433_v10  ;;  %v534_v42 = vadd.f32 %v1955_v39, %v464_v9  ;;  %v535_v33 = vadd.f32 %v1955_v39, %v465_v1 }
  0xc9   :  { %v564_v14 = vmax.f32 %v500_v16, 0.0  ;;  %v565_v27 = vmax.f32 %v501_v15, 0.0  ;;  %v596_v61 = vmax.f32 %v532_v8, 0.0  ;;  %v597_v17 = vmax.f32 %v533_v11, 0.0 }
  0xca   :  { %v566_v49 = vmax.f32 %v502_v57, 0.0  ;;  %v567_v59 = vmax.f32 %v503_v28, 0.0  ;;  %v598_v31 = vmax.f32 %v534_v42, 0.0  ;;  %v599_v18 = vmax.f32 %v535_v33, 0.0 }
  0xcb   :  { %v628_v40 = vpack.c.bf16 %v565_v27, %v564_v14  ;;  %v644_v46 = vpack.c.bf16 %v597_v17, %v596_v61  ;;  %v504_v43 = vadd.f32 %v1955_v39, %v434_v2  ;;  %v505_v25 = vadd.f32 %v1955_v39, %v435_v45 }
  0xcc   :  { %v629_v50 = vpack.c.bf16 %v567_v59, %v566_v49  ;;  %v645_v53 = vpack.c.bf16 %v599_v18, %v598_v31  ;;  %v536_v63 = vadd.f32 %v1955_v39, %v466_v3  ;;  %v537_v12 = vadd.f32 %v1955_v39, %v467_v4 }
  0xcd   :  { %1190 = vmatprep.mubr.msk.bf16.mxu0 %vm82_vm0, %v628_v40  ;;  %1222 = vmatprep.mubr.msk.bf16.mxu1 %vm82_vm0, %v644_v46  ;;  %v568_v30 = vmax.f32 %v504_v43, 0.0  ;;  %v569_v7 = vmax.f32 %v505_v25, 0.0  ;;  %v506_v52 = vadd.f32 %v1955_v39, %v436_v55  ;;  %v507_v21 = vadd.f32 %v1955_v39, %v437_v5 }
  0xce   :  { %1191 = vmatmul.mubr.msk.bf16.vlgmr.msra.gmra.mrb[0].mxu0 %vm82_vm0, %v629_v50  ;;  %1223 = vmatmul.mubr.msk.bf16.vlgmr.msra.gmra.mrb[0].mxu1 %vm82_vm0, %v645_v53  ;;  %v600_v10 = vmax.f32 %v536_v63, 0.0  ;;  %v601_v9 = vmax.f32 %v537_v12, 0.0  ;;  %v468_v1 = vmul.f32 %v1939_v58, %v1621_v54  ;;  %v469_v2 = vmul.f32 %v1939_v58, %v1631_v6 }
  0xcf   :  { %v630_v45 = vpack.c.bf16 %v569_v7, %v568_v30  ;;  %v570_v3 = vmax.f32 %v506_v52, 0.0  ;;  %v571_v4 = vmax.f32 %v507_v21, 0.0  ;;  %v438_v55 = vmul.f32 %v1939_v58, %v1350_v20 }
  0xd0   :  { %v646_v16 = vpack.c.bf16 %v601_v9, %v600_v10  ;;  %v538_v5 = vadd.f32 %v1955_v39, %v468_v1  ;;  %v539_v15 = vadd.f32 %v1955_v39, %v469_v2  ;;  %v439_v8 = vmul.f32 %v1939_v58, %v1357_v23 }
  0xd1   :  { %1194 = vmatprep.mubr.msk.bf16.mxu0 %vm82_vm0, %v630_v45  ;;  %v631_v54 = vpack.c.bf16 %v571_v4, %v570_v3  ;;  %v508_v11 = vadd.f32 %v1955_v39, %v438_v55  ;;  %v470_v6 = vmul.f32 %v1939_v58, %v1641_v19  ;;  %v471_v57 = vmul.f32 %v1939_v58, %v1651_v36 }
  0xd2   :  { %1226 = vmatprep.mubr.msk.bf16.mxu1 %vm82_vm0, %v646_v16  ;;  %v602_v20 = vmax.f32 %v538_v5, 0.0  ;;  %v603_v28 = vmax.f32 %v539_v15, 0.0  ;;  %v509_v42 = vadd.f32 %v1955_v39, %v439_v8  ;;  %v440_v23 = vmul.f32 %v1939_v58, %v1364_v26 }
  0xd3   :  { %v572_v33 = vmax.f32 %v508_v11, 0.0  ;;  %v540_v14 = vadd.f32 %v1955_v39, %v470_v6  ;;  %v541_v27 = vadd.f32 %v1955_v39, %v471_v57  ;;  %v441_v19 = vmul.f32 %v1939_v58, %v1371_v29 }
  0xd4   :  { %v647_v61 = vpack.c.bf16 %v603_v28, %v602_v20  ;;  %v573_v17 = vmax.f32 %v509_v42, 0.0  ;;  %v510_v36 = vadd.f32 %v1955_v39, %v440_v23  ;;  %v472_v49 = vmul.f32 %v1939_v58, %v1661_v51  ;;  %v2478_v23 = vld [vmem:[#allocation2_spill] sm:$0xff] }
  0xd5   :  { %v604_v59 = vmax.f32 %v540_v14, 0.0  ;;  %v605_v31 = vmax.f32 %v541_v27, 0.0  ;;  %v511_v18 = vadd.f32 %v1955_v39, %v441_v19  ;;  %v473_v26 = vmul.f32 %v1939_v58, %v1671_v62  ;;  %v2479_v19 = vld [vmem:[#allocation3_spill] sm:$0xff] }
  0xd6   :  { %1195 = vmatmul.mubr.msk.bf16.gmra.mrb[4].mxu0 %vm82_vm0, %v631_v54  ;;  %1227 = vmatmul.mubr.msk.bf16.gmra.mrb[4].mxu1 %vm82_vm0, %v647_v61  ;;  %v632_v40 = vpack.c.bf16 %v573_v17, %v572_v33  ;;  %v574_v29 = vmax.f32 %v510_v36, 0.0  ;;  %v542_v46 = vadd.f32 %v1955_v39, %v472_v49  ;;  %v442_v43 = vmul.f32 %v1939_v58, %v1378_v32 }
  0xd7   :  { %v648_v25 = vpack.c.bf16 %v605_v31, %v604_v59  ;;  %v575_v51 = vmax.f32 %v511_v18, 0.0  ;;  %v543_v50 = vadd.f32 %v1955_v39, %v473_v26  ;;  %v443_v53 = vmul.f32 %v1939_v58, %v1385_v35  ;;  %v2480_v18 = vld [vmem:[#allocation10_spill] sm:$0xff] }
  0xd8   :  { %1198 = vmatprep.mubr.msk.bf16.mxu0 %vm82_vm0, %v632_v40  ;;  %v606_v62 = vmax.f32 %v542_v46, 0.0  ;;  %v512_v63 = vadd.f32 %v1955_v39, %v442_v43  ;;  %v474_v12 = vmul.f32 %v1939_v58, %v1681_v22  ;;  %v475_v30 = vmul.f32 %v1939_v58, %v1691_v48  ;;  %v2481_v43 = vld [vmem:[#allocation4_spill] sm:$0xff] }
  0xd9   :  { %1230 = vmatprep.mubr.msk.bf16.mxu1 %vm82_vm0, %v648_v25  ;;  %v633_v32 = vpack.c.bf16 %v575_v51, %v574_v29  ;;  %v607_v7 = vmax.f32 %v543_v50, 0.0  ;;  %v513_v52 = vadd.f32 %v1955_v39, %v443_v53  ;;  %v444_v35 = vmul.f32 %v1939_v58, %v1392_v38 }
  0xda   :  { %v576_v21 = vmax.f32 %v512_v63, 0.0  ;;  %v544_v10 = vadd.f32 %v1955_v39, %v474_v12  ;;  %v545_v9 = vadd.f32 %v1955_v39, %v475_v30  ;;  %v445_v22 = vmul.f32 %v1939_v58, %v1399_v41  ;;  %v2483_v30 = vld [vmem:[#allocation11_spill] sm:$0xff] }
  0xdb   :  { %v649_v1 = vpack.c.bf16 %v607_v7, %v606_v62  ;;  %v577_v2 = vmax.f32 %v513_v52, 0.0  ;;  %v514_v48 = vadd.f32 %v1955_v39, %v444_v35  ;;  %v476_v45 = vmul.f32 %v1939_v58, %v1701_v56  ;;  %v2482_v62 = vld [vmem:[#allocation5_spill] sm:$0xff]  ;;  %v2484_v7 = vld [vmem:[#allocation12_spill] sm:$0xff] }
  0xdc   :  { %v608_v3 = vmax.f32 %v544_v10, 0.0  ;;  %v609_v4 = vmax.f32 %v545_v9, 0.0  ;;  %v515_v55 = vadd.f32 %v1955_v39, %v445_v22  ;;  %v477_v38 = vmul.f32 %v1939_v58, %v1711_v0  ;;  %v2485_v9 = vld [vmem:[#allocation6_spill] sm:$0xff] }
  0xdd   :  { %v634_v16 = vpack.c.bf16 %v577_v2, %v576_v21  ;;  %v578_v5 = vmax.f32 %v514_v48, 0.0  ;;  %v546_v15 = vadd.f32 %v1955_v39, %v476_v45  ;;  %v446_v41 = vmul.f32 %v1939_v58, %v1406_v44  ;;  %v2486_v45 = vld [vmem:[#allocation7_spill] sm:$0xff] }
  0xde   :  { %1199 = vmatmul.mubr.msk.bf16.gmra.mrb[8].mxu0 %vm82_vm0, %v633_v32  ;;  %1231 = vmatmul.mubr.msk.bf16.gmra.mrb[8].mxu1 %vm82_vm0, %v649_v1  ;;  %v650_v8 = vpack.c.bf16 %v609_v4, %v608_v3  ;;  %v579_v56 = vmax.f32 %v515_v55, 0.0  ;;  %v547_v54 = vadd.f32 %v1955_v39, %v477_v38  ;;  %v447_v11 = vmul.f32 %v1939_v58, %v1413_v47 }
  0xdf   :  { %1202 = vmatprep.mubr.msk.bf16.mxu0 %vm82_vm0, %v634_v16  ;;  %v610_v0 = vmax.f32 %v546_v15, 0.0  ;;  %v516_v6 = vadd.f32 %v1955_v39, %v446_v41  ;;  %v478_v57 = vmul.f32 %v1939_v58, %v1721_v13  ;;  %v479_v44 = vmul.f32 %v1939_v58, %v1731_v24  ;;  %v2487_v16 = vld [vmem:[#allocation13_spill] sm:$0xff] }
  0xe0   :  { %1234 = vmatprep.mubr.msk.bf16.mxu1 %vm82_vm0, %v650_v8  ;;  %v635_v20 = vpack.c.bf16 %v579_v56, %v578_v5  ;;  %v611_v28 = vmax.f32 %v547_v54, 0.0  ;;  %v517_v42 = vadd.f32 %v1955_v39, %v447_v11  ;;  %v448_v47 = vmul.f32 %v1939_v58, %v2478_v23 }
  0xe1   :  { %v580_v33 = vmax.f32 %v516_v6, 0.0  ;;  %v548_v14 = vadd.f32 %v1955_v39, %v478_v57  ;;  %v549_v27 = vadd.f32 %v1955_v39, %v479_v44  ;;  %v449_v13 = vmul.f32 %v1939_v58, %v2479_v19  ;;  %v2488_v6 = vld [vmem:[#allocation8_spill] sm:$0xff] }
  0xe2   :  { %v651_v61 = vpack.c.bf16 %v611_v28, %v610_v0  ;;  %v581_v17 = vmax.f32 %v517_v42, 0.0  ;;  %v518_v24 = vadd.f32 %v1955_v39, %v448_v47  ;;  %v480_v36 = vmul.f32 %v1939_v58, %v1741_v34  ;;  %v2489_v42 = vld [vmem:[#allocation9_spill] sm:$0xff] }
  0xe3   :  { %v612_v49 = vmax.f32 %v548_v14, 0.0  ;;  %v613_v59 = vmax.f32 %v549_v27, 0.0  ;;  %v519_v31 = vadd.f32 %v1955_v39, %v449_v13  ;;  %v481_v26 = vmul.f32 %v1939_v58, %v2480_v18 }
  0xe4   :  { %v636_v40 = vpack.c.bf16 %v581_v17, %v580_v33  ;;  %v582_v29 = vmax.f32 %v518_v24, 0.0  ;;  %v550_v46 = vadd.f32 %v1955_v39, %v480_v36  ;;  %v450_v25 = vmul.f32 %v1939_v58, %v2481_v43 }
  0xe5   :  { %v652_v51 = vpack.c.bf16 %v613_v59, %v612_v49  ;;  %v583_v50 = vmax.f32 %v519_v31, 0.0  ;;  %v551_v53 = vadd.f32 %v1955_v39, %v481_v26  ;;  %v451_v34 = vmul.f32 %v1939_v58, %v2482_v62  ;;  %v1260_v49 = vld [vmem:[%s2436_s0 + $0xd8] sm:$0xff] }
  0xe6   :  { %1203 = vmatmul.mubr.msk.bf16.gmra.mrb[12].mxu0 %vm82_vm0, %v635_v20  ;;  %1235 = vmatmul.mubr.msk.bf16.gmra.mrb[12].mxu1 %vm82_vm0, %v651_v61  ;;  %v614_v63 = vmax.f32 %v550_v46, 0.0  ;;  %v520_v12 = vadd.f32 %v1955_v39, %v450_v25  ;;  %v482_v32 = vmul.f32 %v1939_v58, %v2483_v30  ;;  %v483_v52 = vmul.f32 %v1939_v58, %v2484_v7  ;;  %v1259_v61 = vld [vmem:[%s2436_s0 + $0xd0] sm:$0xff] }
  0xe7   :  { %1206 = vmatprep.mubr.msk.bf16.mxu0 %vm82_vm0, %v636_v40  ;;  %1238 = vmatprep.mubr.msk.bf16.mxu1 %vm82_vm0, %v652_v51  ;;  %v637_v35 = vpack.c.bf16 %v583_v50, %v582_v29  ;;  %v615_v21 = vmax.f32 %v551_v53, 0.0  ;;  %v521_v10 = vadd.f32 %v1955_v39, %v451_v34  ;;  %v452_v22 = vmul.f32 %v1939_v58, %v2485_v9  ;;  %v2491_v40 = vld [vmem:[#allocation15_spill] sm:$0xff]  ;;  %v2492_v51 = vld [vmem:[#allocation16_spill] sm:$0xff]  ;;  %v2493_v9 = vld [vmem:[#allocation17_spill] sm:$0xff] }
  0xe8   :  { %v584_v1 = vmax.f32 %v520_v12, 0.0  ;;  %v552_v2 = vadd.f32 %v1955_v39, %v482_v32  ;;  %v553_v48 = vadd.f32 %v1955_v39, %v483_v52  ;;  %v453_v3 = vmul.f32 %v1939_v58, %v2486_v45  ;;  %v1262_v52 = vld [vmem:[%s2436_s0 + $0xe8] sm:$0xff] }
  0xe9   :  { %v653_v4 = vpack.c.bf16 %v615_v21, %v614_v63  ;;  %v585_v55 = vmax.f32 %v521_v10, 0.0  ;;  %v522_v38 = vadd.f32 %v1955_v39, %v452_v22  ;;  %v484_v5 = vmul.f32 %v1939_v58, %v2487_v16  ;;  %v1261_v63 = vld [vmem:[%s2436_s0 + $0xe0] sm:$0xff] }
  0xea   :  { %v616_v15 = vmax.f32 %v552_v2, 0.0  ;;  %v617_v41 = vmax.f32 %v553_v48, 0.0  ;;  %v523_v8 = vadd.f32 %v1955_v39, %v453_v3  ;;  %v485_v56 = vmul.f32 %v1939_v58, %v1791_v37  ;;  %v2490_v37 = vld [vmem:[#allocation14_spill] sm:$0xff] }
  0xeb   :  { %v638_v54 = vpack.c.bf16 %v585_v55, %v584_v1  ;;  %v586_v11 = vmax.f32 %v522_v38, 0.0  ;;  %v554_v0 = vadd.f32 %v1955_v39, %v484_v5  ;;  %v454_v57 = vmul.f32 %v1939_v58, %v2488_v6  ;;  %v2494_v1 = vld [vmem:[#allocation18_spill] sm:$0xff]  ;;  %v1264_v5 = vld [vmem:[%s2436_s0 + $0xf8] sm:$0xff]  ;;  %v2496_v6 = vld [vmem:[#allocation20_spill] sm:$0xff] }
  0xec   :  { %v654_v44 = vpack.c.bf16 %v617_v41, %v616_v15  ;;  %v587_v20 = vmax.f32 %v523_v8, 0.0  ;;  %v555_v28 = vadd.f32 %v1955_v39, %v485_v56  ;;  %v455_v23 = vmul.f32 %v1939_v58, %v2489_v42  ;;  %v2495_v56 = vld [vmem:[#allocation19_spill] sm:$0xff] }
  0xed   :  { %v524_v47 = vadd.f32 %v1955_v39, %v454_v57  ;;  %v486_v33 = vmul.f32 %v1939_v58, %v1806_v60  ;;  %v487_v14 = vmul.f32 %v1939_v58, %v2490_v37  ;;  %v618_v27 = vmax.f32 %v554_v0, 0.0 }
  0xee   :  { %1207 = vmatmul.mubr.msk.bf16.gmra.mrb[16].mxu0 %vm82_vm0, %v637_v35  ;;  %1239 = vmatmul.mubr.msk.bf16.gmra.mrb[16].mxu1 %vm82_vm0, %v653_v4  ;;  %v619_v19 = vmax.f32 %v555_v28, 0.0  ;;  %v525_v13 = vadd.f32 %v1955_v39, %v455_v23  ;;  %v456_v17 = vmul.f32 %v1259_v61, %v1939_v58  ;;  %v457_v59 = vmul.f32 %v1260_v49, %v1939_v58  ;;  %v1263_v4 = vld [vmem:[%s2436_s0 + $0xf0] sm:$0xff] }
  0xef   :  { %1210 = vmatprep.mubr.msk.bf16.mxu0 %vm82_vm0, %v638_v54  ;;  %1242 = vmatprep.mubr.msk.bf16.mxu1 %vm82_vm0, %v654_v44  ;;  %v588_v60 = vmax.f32 %v524_v47, 0.0  ;;  %v556_v24 = vadd.f32 %v1955_v39, %v486_v33  ;;  %v557_v36 = vadd.f32 %v1955_v39, %v487_v14  ;;  %v639_v31 = vpack.c.bf16 %v587_v20, %v586_v11 }
  0xf0   :  { %v589_v18 = vmax.f32 %v525_v13, 0.0  ;;  %v526_v26 = vadd.f32 %v1955_v39, %v456_v17  ;;  %v488_v29 = vmul.f32 %v1939_v58, %v2491_v40  ;;  %v527_v25 = vadd.f32 %v1955_v39, %v457_v59 }
  0xf1   :  { %v620_v46 = vmax.f32 %v556_v24, 0.0  ;;  %v621_v43 = vmax.f32 %v557_v36, 0.0  ;;  %v489_v50 = vmul.f32 %v1939_v58, %v2492_v51  ;;  %v655_v53 = vpack.c.bf16 %v619_v19, %v618_v27 }
  0xf2   :  { %v640_v62 = vpack.c.bf16 %v589_v18, %v588_v60  ;;  %v558_v34 = vadd.f32 %v1955_v39, %v488_v29  ;;  %v458_v12 = vmul.f32 %v1261_v63, %v1939_v58  ;;  %v590_v32 = vmax.f32 %v526_v26, 0.0 }
  0xf3   :  { %v656_v30 = vpack.c.bf16 %v621_v43, %v620_v46  ;;  %v559_v7 = vadd.f32 %v1955_v39, %v489_v50  ;;  %v459_v35 = vmul.f32 %v1262_v52, %v1939_v58  ;;  %v591_v21 = vmax.f32 %v527_v25, 0.0 }
  0xf4   :  { %v528_v10 = vadd.f32 %v1955_v39, %v458_v12  ;;  %v490_v22 = vmul.f32 %v1939_v58, %v2493_v9  ;;  %v491_v2 = vmul.f32 %v1939_v58, %v2494_v1  ;;  %v622_v48 = vmax.f32 %v558_v34, 0.0 }
  0xf5   :  { %v623_v45 = vmax.f32 %v559_v7, 0.0  ;;  %v529_v3 = vadd.f32 %v1955_v39, %v459_v35  ;;  %v460_v55 = vmul.f32 %v1263_v4, %v1939_v58  ;;  %v461_v15 = vmul.f32 %v1264_v5, %v1939_v58 }
  0xf6   :  { %1211 = vmatmul.mubr.msk.bf16.gmra.mrb[20].mxu0 %vm82_vm0, %v639_v31  ;;  %1243 = vmatmul.mubr.msk.bf16.gmra.mrb[20].mxu1 %vm82_vm0, %v655_v53  ;;  %v560_v38 = vadd.f32 %v1955_v39, %v490_v22  ;;  %v561_v16 = vadd.f32 %v1955_v39, %v491_v2  ;;  %v592_v41 = vmax.f32 %v528_v10, 0.0  ;;  %v492_v54 = vmul.f32 %v1939_v58, %v2495_v56 }
  0xf7   :  { %1214 = vmatprep.mubr.msk.bf16.mxu0 %vm82_vm0, %v640_v62  ;;  %1246 = vmatprep.mubr.msk.bf16.mxu1 %vm82_vm0, %v656_v30  ;;  %v593_v8 = vmax.f32 %v529_v3, 0.0  ;;  %v493_v57 = vmul.f32 %v1939_v58, %v2496_v6  ;;  %v641_v44 = vpack.c.bf16 %v591_v21, %v590_v32  ;;  %v657_v20 = vpack.c.bf16 %v623_v45, %v622_v48 }
  0xf8   :  { %v624_v11 = vmax.f32 %v560_v38, 0.0  ;;  %v625_v0 = vmax.f32 %v561_v16, 0.0  ;;  %v530_v28 = vadd.f32 %v1955_v39, %v460_v55  ;;  %v531_v42 = vadd.f32 %v1955_v39, %v461_v15 }
  0xf9   :  { %v562_v23 = vadd.f32 %v1955_v39, %v492_v54  ;;  %v563_v47 = vadd.f32 %v1955_v39, %v493_v57  ;;  %v642_v33 = vpack.c.bf16 %v593_v8, %v592_v41 }
  0xfa   :  { %v658_v37 = vpack.c.bf16 %v625_v0, %v624_v11  ;;  %v594_v14 = vmax.f32 %v530_v28, 0.0  ;;  %v595_v27 = vmax.f32 %v531_v42, 0.0 }
  0xfb   :  { %v626_v19 = vmax.f32 %v562_v23, 0.0  ;;  %v627_v58 = vmax.f32 %v563_v47, 0.0 }
  0xfc   :  { %v643_v13 = vpack.c.bf16 %v595_v27, %v594_v14 }
  0xfd   :  { %v659_v61 = vpack.c.bf16 %v627_v58, %v626_v19 }
  0xfe   :  { %1215 = vmatmul.mubr.msk.bf16.gmra.mrb[24].mxu0 %vm82_vm0, %v641_v44  ;;  %1247 = vmatmul.mubr.msk.bf16.gmra.mrb[24].mxu1 %vm82_vm0, %v657_v20 }
  0xff   :  { %1218 = vmatprep.mubr.msk.bf16.mxu0 %vm82_vm0, %v642_v33  ;;  %1250 = vmatprep.mubr.msk.bf16.mxu1 %vm82_vm0, %v658_v37 }
 0x106   :  { %1219 = vmatmul.mubr.msk.bf16.gmra.mrb[28].mxu0 %vm82_vm0, %v643_v13  ;;  %1251 = vmatmul.mubr.msk.bf16.gmra.mrb[28].mxu1 %vm82_vm0, %v659_v61 }
 0x1a1   :  { %v1192_v39 = vpop.f32.mrb[0].mxu0  ;;  %v1224_v17 = vpop.f32.mrb[0].mxu1 }
 0x1a2   :  { %1056 = vst.msk [vmem:[%s2439_s4 + $0x10] sm:$0xff] %vm1053_vm1, %v1192_v39  ;;  %1088 = vst.msk [vmem:[%s2439_s4 + $0x110] sm:$0xff] %vm1053_vm1, %v1224_v17  ;;  %v798_v60 = vpop.f32.mrb[1].mxu0  ;;  %v926_v24 = vpop.f32.mrb[1].mxu1 }
 0x1a3   :  { %1054 = vst.msk [vmem:[%s2439_s4] sm:$0xff] %vm1053_vm1, %v798_v60  ;;  %1086 = vst.msk [vmem:[%s2439_s4 + $0x100] sm:$0xff] %vm1053_vm1, %v926_v24  ;;  %v1193_v36 = vpop.f32.mrb[2].mxu0  ;;  %v1225_v49 = vpop.f32.mrb[2].mxu1 }
 0x1a4   :  { %1057 = vst.msk [vmem:[%s2439_s4 + $0x18] sm:$0xff] %vm1053_vm1, %v1193_v36  ;;  %1089 = vst.msk [vmem:[%s2439_s4 + $0x118] sm:$0xff] %vm1053_vm1, %v1225_v49  ;;  %v801_v59 = vpop.f32.mrb[3].mxu0  ;;  %v929_v31 = vpop.f32.mrb[3].mxu1 }
 0x1a5   :  { %1055 = vst.msk [vmem:[%s2439_s4 + $0x8] sm:$0xff] %vm1053_vm1, %v801_v59  ;;  %1087 = vst.msk [vmem:[%s2439_s4 + $0x108] sm:$0xff] %vm1053_vm1, %v929_v31 }
 0x1a9   :  { %v1196_v18 = vpop.f32.mrb[4].mxu0  ;;  %v1228_v26 = vpop.f32.mrb[4].mxu1 }
 0x1aa   :  { %1060 = vst.msk [vmem:[%s2439_s4 + $0x30] sm:$0xff] %vm1053_vm1, %v1196_v18  ;;  %1092 = vst.msk [vmem:[%s2439_s4 + $0x130] sm:$0xff] %vm1053_vm1, %v1228_v26  ;;  %v814_v40 = vpop.f32.mrb[5].mxu0  ;;  %v942_v29 = vpop.f32.mrb[5].mxu1 }
 0x1ab   :  { %1058 = vst.msk [vmem:[%s2439_s4 + $0x20] sm:$0xff] %vm1053_vm1, %v814_v40  ;;  %1090 = vst.msk [vmem:[%s2439_s4 + $0x120] sm:$0xff] %vm1053_vm1, %v942_v29  ;;  %v1197_v46 = vpop.f32.mrb[6].mxu0  ;;  %v1229_v43 = vpop.f32.mrb[6].mxu1 }
 0x1ac   :  { %1061 = vst.msk [vmem:[%s2439_s4 + $0x38] sm:$0xff] %vm1053_vm1, %v1197_v46  ;;  %1093 = vst.msk [vmem:[%s2439_s4 + $0x138] sm:$0xff] %vm1053_vm1, %v1229_v43  ;;  %v817_v25 = vpop.f32.mrb[7].mxu0  ;;  %v945_v51 = vpop.f32.mrb[7].mxu1 }
 0x1ad   :  { %1059 = vst.msk [vmem:[%s2439_s4 + $0x28] sm:$0xff] %vm1053_vm1, %v817_v25  ;;  %1091 = vst.msk [vmem:[%s2439_s4 + $0x128] sm:$0xff] %vm1053_vm1, %v945_v51 }
 0x1b1   :  { %v1200_v50 = vpop.f32.mrb[8].mxu0  ;;  %v1232_v53 = vpop.f32.mrb[8].mxu1 }
 0x1b2   :  { %1064 = vst.msk [vmem:[%s2439_s4 + $0x50] sm:$0xff] %vm1053_vm1, %v1200_v50  ;;  %1096 = vst.msk [vmem:[%s2439_s4 + $0x150] sm:$0xff] %vm1053_vm1, %v1232_v53  ;;  %v830_v62 = vpop.f32.mrb[9].mxu0  ;;  %v958_v34 = vpop.f32.mrb[9].mxu1 }
 0x1b3   :  { %1062 = vst.msk [vmem:[%s2439_s4 + $0x40] sm:$0xff] %vm1053_vm1, %v830_v62  ;;  %1094 = vst.msk [vmem:[%s2439_s4 + $0x140] sm:$0xff] %vm1053_vm1, %v958_v34  ;;  %v1201_v63 = vpop.f32.mrb[10].mxu0  ;;  %v1233_v12 = vpop.f32.mrb[10].mxu1 }
 0x1b4   :  { %1065 = vst.msk [vmem:[%s2439_s4 + $0x58] sm:$0xff] %vm1053_vm1, %v1201_v63  ;;  %1097 = vst.msk [vmem:[%s2439_s4 + $0x158] sm:$0xff] %vm1053_vm1, %v1233_v12  ;;  %v833_v30 = vpop.f32.mrb[11].mxu0  ;;  %v961_v32 = vpop.f32.mrb[11].mxu1 }
 0x1b5   :  { %1063 = vst.msk [vmem:[%s2439_s4 + $0x48] sm:$0xff] %vm1053_vm1, %v833_v30  ;;  %1095 = vst.msk [vmem:[%s2439_s4 + $0x148] sm:$0xff] %vm1053_vm1, %v961_v32 }
 0x1b9   :  { %v1204_v7 = vpop.f32.mrb[12].mxu0  ;;  %v1236_v52 = vpop.f32.mrb[12].mxu1 }
 0x1ba   :  { %1068 = vst.msk [vmem:[%s2439_s4 + $0x70] sm:$0xff] %vm1053_vm1, %v1204_v7  ;;  %1100 = vst.msk [vmem:[%s2439_s4 + $0x170] sm:$0xff] %vm1053_vm1, %v1236_v52  ;;  %v846_v35 = vpop.f32.mrb[13].mxu0  ;;  %v974_v21 = vpop.f32.mrb[13].mxu1 }
 0x1bb   :  { %1066 = vst.msk [vmem:[%s2439_s4 + $0x60] sm:$0xff] %vm1053_vm1, %v846_v35  ;;  %1098 = vst.msk [vmem:[%s2439_s4 + $0x160] sm:$0xff] %vm1053_vm1, %v974_v21  ;;  %v1205_v10 = vpop.f32.mrb[14].mxu0  ;;  %v1237_v9 = vpop.f32.mrb[14].mxu1 }
 0x1bc   :  { %1069 = vst.msk [vmem:[%s2439_s4 + $0x78] sm:$0xff] %vm1053_vm1, %v1205_v10  ;;  %1101 = vst.msk [vmem:[%s2439_s4 + $0x178] sm:$0xff] %vm1053_vm1, %v1237_v9  ;;  %v849_v22 = vpop.f32.mrb[15].mxu0  ;;  %v977_v1 = vpop.f32.mrb[15].mxu1 }
 0x1bd   :  { %1067 = vst.msk [vmem:[%s2439_s4 + $0x68] sm:$0xff] %vm1053_vm1, %v849_v22  ;;  %1099 = vst.msk [vmem:[%s2439_s4 + $0x168] sm:$0xff] %vm1053_vm1, %v977_v1 }
 0x1c1   :  { %v1208_v2 = vpop.f32.mrb[16].mxu0  ;;  %v1240_v48 = vpop.f32.mrb[16].mxu1 }
 0x1c2   :  { %1072 = vst.msk [vmem:[%s2439_s4 + $0x90] sm:$0xff] %vm1053_vm1, %v1208_v2  ;;  %1104 = vst.msk [vmem:[%s2439_s4 + $0x190] sm:$0xff] %vm1053_vm1, %v1240_v48  ;;  %v862_v45 = vpop.f32.mrb[17].mxu0  ;;  %v990_v3 = vpop.f32.mrb[17].mxu1 }
 0x1c3   :  { %1070 = vst.msk [vmem:[%s2439_s4 + $0x80] sm:$0xff] %vm1053_vm1, %v862_v45  ;;  %1102 = vst.msk [vmem:[%s2439_s4 + $0x180] sm:$0xff] %vm1053_vm1, %v990_v3  ;;  %v1209_v4 = vpop.f32.mrb[18].mxu0  ;;  %v1241_v55 = vpop.f32.mrb[18].mxu1 }
 0x1c4   :  { %1073 = vst.msk [vmem:[%s2439_s4 + $0x98] sm:$0xff] %vm1053_vm1, %v1209_v4  ;;  %1105 = vst.msk [vmem:[%s2439_s4 + $0x198] sm:$0xff] %vm1053_vm1, %v1241_v55  ;;  %v865_v38 = vpop.f32.mrb[19].mxu0  ;;  %v993_v16 = vpop.f32.mrb[19].mxu1 }
 0x1c5   :  { %1071 = vst.msk [vmem:[%s2439_s4 + $0x88] sm:$0xff] %vm1053_vm1, %v865_v38  ;;  %1103 = vst.msk [vmem:[%s2439_s4 + $0x188] sm:$0xff] %vm1053_vm1, %v993_v16 }
 0x1c9   :  { %v1212_v5 = vpop.f32.mrb[20].mxu0  ;;  %v1244_v15 = vpop.f32.mrb[20].mxu1 }
 0x1ca   :  { %1076 = vst.msk [vmem:[%s2439_s4 + $0xb0] sm:$0xff] %vm1053_vm1, %v1212_v5  ;;  %1108 = vst.msk [vmem:[%s2439_s4 + $0x1b0] sm:$0xff] %vm1053_vm1, %v1244_v15  ;;  %v878_v41 = vpop.f32.mrb[21].mxu0  ;;  %v1006_v8 = vpop.f32.mrb[21].mxu1 }
 0x1cb   :  { %1074 = vst.msk [vmem:[%s2439_s4 + $0xa0] sm:$0xff] %vm1053_vm1, %v878_v41  ;;  %1106 = vst.msk [vmem:[%s2439_s4 + $0x1a0] sm:$0xff] %vm1053_vm1, %v1006_v8  ;;  %v1213_v56 = vpop.f32.mrb[22].mxu0  ;;  %v1245_v54 = vpop.f32.mrb[22].mxu1 }
 0x1cc   :  { %1077 = vst.msk [vmem:[%s2439_s4 + $0xb8] sm:$0xff] %vm1053_vm1, %v1213_v56  ;;  %1109 = vst.msk [vmem:[%s2439_s4 + $0x1b8] sm:$0xff] %vm1053_vm1, %v1245_v54  ;;  %v881_v11 = vpop.f32.mrb[23].mxu0  ;;  %v1009_v0 = vpop.f32.mrb[23].mxu1 }
 0x1cd   :  { %1075 = vst.msk [vmem:[%s2439_s4 + $0xa8] sm:$0xff] %vm1053_vm1, %v881_v11  ;;  %1107 = vst.msk [vmem:[%s2439_s4 + $0x1a8] sm:$0xff] %vm1053_vm1, %v1009_v0 }
 0x1d1   :  { %v1216_v6 = vpop.f32.mrb[24].mxu0  ;;  %v1248_v57 = vpop.f32.mrb[24].mxu1 }
 0x1d2   :  { %1080 = vst.msk [vmem:[%s2439_s4 + $0xd0] sm:$0xff] %vm1053_vm1, %v1216_v6  ;;  %1112 = vst.msk [vmem:[%s2439_s4 + $0x1d0] sm:$0xff] %vm1053_vm1, %v1248_v57  ;;  %v894_v44 = vpop.f32.mrb[25].mxu0  ;;  %v1022_v20 = vpop.f32.mrb[25].mxu1 }
 0x1d3   :  { %1078 = vst.msk [vmem:[%s2439_s4 + $0xc0] sm:$0xff] %vm1053_vm1, %v894_v44  ;;  %1110 = vst.msk [vmem:[%s2439_s4 + $0x1c0] sm:$0xff] %vm1053_vm1, %v1022_v20  ;;  %v1217_v28 = vpop.f32.mrb[26].mxu0  ;;  %v1249_v42 = vpop.f32.mrb[26].mxu1 }
 0x1d4   :  { %1081 = vst.msk [vmem:[%s2439_s4 + $0xd8] sm:$0xff] %vm1053_vm1, %v1217_v28  ;;  %1113 = vst.msk [vmem:[%s2439_s4 + $0x1d8] sm:$0xff] %vm1053_vm1, %v1249_v42  ;;  %v897_v23 = vpop.f32.mrb[27].mxu0  ;;  %v1025_v47 = vpop.f32.mrb[27].mxu1 }
 0x1d5   :  { %1079 = vst.msk [vmem:[%s2439_s4 + $0xc8] sm:$0xff] %vm1053_vm1, %v897_v23  ;;  %1111 = vst.msk [vmem:[%s2439_s4 + $0x1c8] sm:$0xff] %vm1053_vm1, %v1025_v47 }
 0x1d9   :  { %v1220_v33 = vpop.f32.mrb[28].mxu0  ;;  %v1252_v37 = vpop.f32.mrb[28].mxu1 }
 0x1da   :  { %1084 = vst.msk [vmem:[%s2439_s4 + $0xf0] sm:$0xff] %vm1053_vm1, %v1220_v33  ;;  %1116 = vst.msk [vmem:[%s2439_s4 + $0x1f0] sm:$0xff] %vm1053_vm1, %v1252_v37  ;;  %v910_v14 = vpop.f32.mrb[29].mxu0  ;;  %v1038_v27 = vpop.f32.mrb[29].mxu1 }
 0x1db   :  { %1082 = vst.msk [vmem:[%s2439_s4 + $0xe0] sm:$0xff] %vm1053_vm1, %v910_v14  ;;  %1114 = vst.msk [vmem:[%s2439_s4 + $0x1e0] sm:$0xff] %vm1053_vm1, %v1038_v27  ;;  %v1221_v19 = vpop.f32.mrb[30].mxu0  ;;  %v1253_v58 = vpop.f32.mrb[30].mxu1 }
 0x1dc   :  { %1085 = vst.msk [vmem:[%s2439_s4 + $0xf8] sm:$0xff] %vm1053_vm1, %v1221_v19  ;;  %1117 = vst.msk [vmem:[%s2439_s4 + $0x1f8] sm:$0xff] %vm1053_vm1, %v1253_v58  ;;  %v913_v13 = vpop.f32.mrb[31].mxu0  ;;  %v1041_v61 = vpop.f32.mrb[31].mxu1 }
 0x1dd   :  { %1083 = vst.msk [vmem:[%s2439_s4 + $0xe8] sm:$0xff] %vm1053_vm1, %v913_v13  ;;  %1115 = vst.msk [vmem:[%s2439_s4 + $0x1e8] sm:$0xff] %vm1053_vm1, %v1041_v61 }

// kernel: conv_decoder_forward.7
= control target key start
LH: loop header
LB: loop body
LE: loop exit
PB: predicated region body
PF: predicated region fallthrough
CT: control target
= control target key end

     0   :  { %s334_s6 = smov 0   ;;  %s371_s0 = inlined_call_operand.vmem [shape: f32[3,2048], index: 0, kind: input, shape index: {}]   ;;  %s372_s1 = inlined_call_operand.vmem [shape: f32[3,2048], index: 1, kind: output, shape index: {}]  }
   0x1 LB: > { %s275_s7 = sadd.s32 4294967295, %s321_s6   ;;  %p279_p0 = scmp.ge.s32.totalorder %s321_s6, 1  ;;  %s321_s6 = sphi %s334_s6, %s11_s6  }
   0x2   : > { %p88_p1 = scmp.lt.s32.totalorder %s321_s6, 5 }
   0x4   : > { %p89_p2 = pnand %p279_p0, %p88_p1 }
   0x5   : > { %s280_s8 = sshll.u32 (!%p89_p2), %s275_s7, 2  ;;  %vm132_vm0 = vcmask (!%p89_p2), 1042432   ;;  %v323_v54 = vmov (!%p89_p2), 0.0  }
   0x6   : > { %92 = sbr.rel (%p89_p2) target bundleno = 81 (0x51), region = 24  ;;  %p109_p3 = scmp.lt.s32.totalorder (!%p89_p2), %s280_s8, 15 }
   0xd   : > { %s374_s8 = smov (!%p109_p3, %s280_s8), 15 }
   0xe   : > { %s281_s9 = sshll.u32 %s374_s8, 2 }
   0xf   : > { %s112_s12 = scalar_lea.vmem %s371_s0, %s281_s9  ;;  %s118_s15 = scalar_lea.vmem %s372_s1, %s281_s9 }
  0x10   : > { %v120_v0 = vld [vmem:[%s112_s12] sm:$0x77]  ;;  %v121_v1 = vld [vmem:[%s112_s12 + $0x8] sm:$0x77] }
  0x11   : > { %299 = vtanh.f32 %v120_v0 }
  0x12   : > { %301 = vtanh.f32 %v121_v1 }
  0x1b   : > { %v350_v2 = vpop.eup %299 }
  0x1c   : > { %v352_v3 = vpop.eup %301  ;;  %v124_v4 = vmul.f32 %v350_v2, %v350_v2 }
  0x1d   : > { %v125_v5 = vmul.f32 %v352_v3, %v352_v3 }
  0x1e   : > { %v128_v6 = vcombine.high %v124_v4, %v124_v4  ;;  %v133_v7 = vsel %vm132_vm0, %v124_v4, 0.0 }
  0x1f   : > { %v129_v8 = vcombine.high %v125_v5, %v125_v5  ;;  %v134_v9 = vrot.slane %v133_v7, 4  ;;  %v147_v10 = vsel %vm132_vm0, %v125_v5, 0.0 }
  0x20   : > { %v140_v11 = vsel %vm132_vm0, %v128_v6, 0.0  ;;  %v148_v12 = vrot.slane %v147_v10, 4 }
  0x21   : > { %v135_v13 = vadd.f32 %v134_v9, %v133_v7  ;;  %v141_v14 = vrot.slane %v140_v11, 4  ;;  %v154_v15 = vsel %vm132_vm0, %v129_v8, 0.0 }
  0x22   : > { %v149_v16 = vadd.f32 %v148_v12, %v147_v10  ;;  %v155_v17 = vrot.slane %v154_v15, 4 }
  0x23   : > { %v136_v18 = vrot.slane %v135_v13, 2  ;;  %v142_v19 = vadd.f32 %v141_v14, %v140_v11 }
  0x24   : > { %v150_v20 = vrot.slane %v149_v16, 2  ;;  %v156_v21 = vadd.f32 %v155_v17, %v154_v15 }
  0x25   : > { %v137_v22 = vadd.f32 %v136_v18, %v135_v13  ;;  %v143_v23 = vrot.slane %v142_v19, 2 }
  0x26   : > { %v151_v24 = vadd.f32 %v150_v20, %v149_v16  ;;  %v157_v25 = vrot.slane %v156_v21, 2 }
  0x27   : > { %v138_v26 = vrot.slane %v137_v22, 1  ;;  %v144_v27 = vadd.f32 %v143_v23, %v142_v19 }
  0x28   : > { %v152_v28 = vrot.slane %v151_v24, 1  ;;  %v158_v29 = vadd.f32 %v157_v25, %v156_v21 }
  0x29   : > { %v139_v30 = vadd.f32 %v138_v26, %v137_v22  ;;  %v145_v31 = vrot.slane %v144_v27, 1 }
  0x2a   : > { %v153_v32 = vadd.f32 %v152_v28, %v151_v24  ;;  %v159_v33 = vrot.slane %v158_v29, 1 }
  0x2b   : > { %v146_v34 = vadd.f32 %v145_v31, %v144_v27  ;;  %303 = vrsqrt.f32 %v139_v30  ;;  %vm163_vm1 = vcmp.eq.f32.partialorder %v139_v30, inf  ;;  %vm165_vm2 = vcmp.eq.f32.partialorder %v139_v30, 0.0 }
  0x2c   : > { %v160_v35 = vadd.f32 %v159_v33, %v158_v29  ;;  %305 = vrsqrt.f32 %v153_v32  ;;  %v166_v37 = vand.u32 2147483648, %v139_v30  ;;  %vm177_vm4 = vcmp.eq.f32.partialorder %v153_v32, inf }
  0x2d   : > { %307 = vrsqrt.f32 %v146_v34  ;;  %vm170_vm3 = vcmp.eq.f32.partialorder %v146_v34, inf  ;;  %v180_v40 = vand.u32 2147483648, %v153_v32  ;;  %vm172_vm5 = vcmp.eq.f32.partialorder %v146_v34, 0.0 }
  0x2e   : > { %309 = vrsqrt.f32 %v160_v35  ;;  %v173_v42 = vand.u32 2147483648, %v146_v34  ;;  %vm179_vm6 = vcmp.eq.f32.partialorder %v153_v32, 0.0  ;;  %vm184_vm7 = vcmp.eq.f32.partialorder %v160_v35, inf }
  0x2f   : > { %v187_v47 = vand.u32 2147483648, %v160_v35  ;;  %vm186_vm8 = vcmp.eq.f32.partialorder %v160_v35, 0.0 }
  0x35   : > { %v304_v36 = vpop.eup %303 }
  0x36   : > { %v306_v38 = vpop.eup %305  ;;  %v162_v39 = vmul.f32 %v304_v36, %v139_v30 }
  0x37   : > { %v308_v41 = vpop.eup %307  ;;  %v176_v43 = vmul.f32 %v306_v38, %v153_v32 }
  0x38   : > { %v310_v44 = vpop.eup %309  ;;  %v164_v45 = vsel %vm163_vm1, %v139_v30, %v162_v39  ;;  %v169_v46 = vmul.f32 %v308_v41, %v146_v34 }
  0x39   : > { %v167_v48 = vsel %vm165_vm2, %v166_v37, %v164_v45  ;;  %v178_v49 = vsel %vm177_vm4, %v153_v32, %v176_v43  ;;  %v183_v50 = vmul.f32 %v310_v44, %v160_v35 }
  0x3a   : > { %v171_v51 = vsel %vm170_vm3, %v146_v34, %v169_v46  ;;  %vm189_vm9 = vcmp.eq.f32.partialorder %v167_v48, 0.0  ;;  %v181_v52 = vsel %vm179_vm6, %v180_v40, %v178_v49 }
  0x3b   : > { %v174_v53 = vsel %vm172_vm5, %v173_v42, %v171_v51  ;;  %v284_v55 = vsel %vm189_vm9, 1.0, %v323_v54  ;;  %v185_v56 = vsel %vm184_vm7, %v160_v35, %v183_v50  ;;  %vm191_vm10 = vcmp.eq.f32.partialorder %v181_v52, 0.0 }
  0x3c   : > { %vm190_vm11 = vcmp.eq.f32.partialorder %v174_v53, 0.0  ;;  %v201_v57 = vadd.f32 %v284_v55, %v167_v48  ;;  %v188_v58 = vsel %vm186_vm8, %v187_v47, %v185_v56  ;;  %v286_v59 = vsel %vm191_vm10, 1.0, %v323_v54 }
  0x3d   : > { %v285_v60 = vsel %vm190_vm11, 1.0, %v323_v54  ;;  %vm192_vm12 = vcmp.eq.f32.partialorder %v188_v58, 0.0  ;;  %v203_v61 = vadd.f32 %v286_v59, %v181_v52 }
  0x3e   : > { %v202_v62 = vadd.f32 %v285_v60, %v174_v53  ;;  %v287_v63 = vsel %vm192_vm12, 1.0, %v323_v54 }
  0x3f   : > { %v204_v0 = vadd.f32 %v287_v63, %v188_v58 }
  0x40   : > { %v209_v1 = vcombine.low %v201_v57, %v202_v62 }
  0x41   : > { %v210_v4 = vcombine.low %v203_v61, %v204_v0 }
  0x42   : > { %311 = vrcp.f32 %v209_v1 }
  0x43   : > { %313 = vrcp.f32 %v210_v4 }
  0x4c   : > { %v312_v5 = vpop.eup %311 }
  0x4d   : > { %v314_v6 = vpop.eup %313  ;;  %v214_v7 = vmul.f32 %v312_v5, %v350_v2 }
  0x4e   : > { %v216_v8 = vmul.f32 %v314_v6, %v352_v3 }
  0x4f   : > { %217 = vst [vmem:[%s118_s15] sm:$0x77] %v214_v7 }
  0x50   : > { %218 = vst [vmem:[%s118_s15 + $0x8] sm:$0x77] %v216_v8 }
  0x51 PF: > { %s11_s6 = sadd.s32 1, %s321_s6  }
  0x52   : > { %p8_p4 = scmp.ge.s32.totalorder %s11_s6, 6  }
  0x54   :  { %10 = sbr.rel (!%p8_p4) target bundleno = 1 (0x1), region = 54 }

</bundles_post_ra>
